<compile_context>
chip_gen: v7x
topology: tpu7x:2x2x1
jax: 0.10.0
libtpu: 0.0.40
codegen_flags: <defaults>
</compile_context>

<pallas_src>
import functools

import jax
import jax.numpy as jnp
from jax.experimental import pallas as pl
from jax.experimental.pallas import tpu as pltpu


def _patch_merging_kernel(W, C, TR, x_ref, g_ref, b_ref, w_ref,
                          out_ref, idx_ref, fea_ref):
    # x_ref:   (2*TR, Wh, 2*C)  2*TR input rows; lanes = [col 2j chans | col 2j+1 chans]
    # g_ref/b_ref: (1, C)       LayerNorm gamma / beta
    # w_ref:   (C, No)          Linear weight, transposed & lane-padded
    # out_ref: (TR*Wh, No)
    # idx_ref: (TR*Wh, C) int32 flat spatial argmax index (h*W + w)
    # fea_ref: (2*TR, Wh, 2*C)  normalized features (pre-pool), channels-last pairs
    Wh = W // 2
    r = pl.program_id(1)

    g = g_ref[...].reshape(1, 1, C).astype(jnp.float32)
    b = b_ref[...].reshape(1, 1, C).astype(jnp.float32)

    def layer_norm(v):                       # v: (2*TR, Wh, C) float32
        mean = jnp.mean(v, axis=-1, keepdims=True)
        var = jnp.mean((v - mean) ** 2, axis=-1, keepdims=True)
        return (v - mean) * jax.lax.rsqrt(var + 1e-5) * g + b

    # Even / odd columns live in the two lane halves of the dense tile.
    xa = layer_norm(x_ref[:, :, pl.ds(0, C)].astype(jnp.float32))
    xb = layer_norm(x_ref[:, :, pl.ds(C, C)].astype(jnp.float32))
    # One full-width 2C-lane store (unmasked vst even for C = 64 stages).
    fea_ref[...] = jnp.concatenate([xa, xb], axis=-1).astype(fea_ref.dtype)

    # Split even/odd input rows (leading-dim split only; trailing (Wh, C) layout unchanged).
    xa4 = xa.reshape(TR, 2, Wh, C)
    xb4 = xb.reshape(TR, 2, Wh, C)
    c00, c10 = xa4[:, 0], xa4[:, 1]          # (TR, Wh, C)
    c01, c11 = xb4[:, 0], xb4[:, 1]

    # 2x2 max + argmax; ties keep the first candidate in PyTorch traversal order
    # (00, 01, 10, 11), hence strict '>' everywhere.
    t01 = c01 > c00
    v_top = jnp.where(t01, c01, c00)
    t11 = c11 > c10
    v_bot = jnp.where(t11, c11, c10)
    bot = v_bot > v_top
    best_v = jnp.where(bot, v_bot, v_top)
    dw = jnp.where(bot, t11.astype(jnp.int32), t01.astype(jnp.int32))
    dh = bot.astype(jnp.int32)

    rr = jax.lax.broadcasted_iota(jnp.int32, (TR, Wh, C), 0)   # local pooled row
    jj = jax.lax.broadcasted_iota(jnp.int32, (TR, Wh, C), 1)   # pooled column
    best_i = (2 * (r * TR + rr) + dh) * W + 2 * jj + dw

    # (TR, Wh, C) -> (TR*Wh, C) is a free sublane re-stack when Wh % 8 == 0 (the usual
    # ViTAE resolutions); feed the idx store and the MXU directly -- no scratch slab,
    # no per-row stores, no reload before the matmul.
    idx_ref[...] = best_i.reshape(TR * Wh, C)
    lhs = best_v.reshape(TR * Wh, C).astype(w_ref.dtype)
    out_ref[...] = jnp.dot(lhs, w_ref[...],
                           preferred_element_type=jnp.float32).astype(out_ref.dtype)


def _device_params():
    """Return (vmem_budget_bytes, vmem_limit_bytes, multi_tensorcore)."""
    cap = None
    multi_tc = False
    try:
        info = pltpu.get_tpu_info()
        cap = getattr(info, "vmem_capacity_bytes", None)
        for name in ("num_cores", "num_tensorcores", "tensorcores_per_chip",
                     "cores_per_chip"):
            n = getattr(info, name, None)
            if n:
                multi_tc = int(n) > 1
                break
    except Exception:
        cap = None
    if not cap:
        cap = 64 * 1024 * 1024                    # conservative default (v7x per-TC size)
    vmem_limit = min(cap // 2, 64 * 1024 * 1024)  # headroom for spills / relayouts
    budget = vmem_limit // 2                      # chooser target: half the scoped limit
    if not multi_tc:
        try:
            kind = jax.devices()[0].device_kind.lower()
            # v4 / v5p megacore and v7x expose 2 TensorCores per device.
            multi_tc = any(tag in kind for tag in ("v4", "v5p", "v7", "7x"))
        except Exception:
            multi_tc = False
    return budget, vmem_limit, multi_tc


def _choose_rows_per_step(B, Hh, Wh, C, No, x_isz, w_isz,
                          budget_bytes, multi_tc, max_rows=64):
    """Largest TR (pooled rows / grid step) that divides Hh, keeps the out/idx blocks
    sublane-aligned, and fits a double-buffered VMEM estimate that also accounts for
    the f32 LayerNorm / pooling-tournament live set."""
    def est(tr):
        x_blk = 2 * tr * Wh * 2 * C * x_isz          # x tile (fea tile is identical)
        out_blk = tr * Wh * No * x_isz
        idx_blk = tr * Wh * C * 4
        w_blk = C * No * w_isz
        live_f32 = 16 * tr * Wh * C * 4              # xa/xb, candidates, masks, iotas, ...
        return (2 * (x_blk + w_blk)                  # double-buffered inputs
                + 2 * (x_blk + out_blk + idx_blk)    # double-buffered outputs
                + live_f32)                          # in-kernel f32 intermediates

    valid = [t for t in range(1, Hh + 1)
             if Hh % t == 0 and (t == Hh or (t * Wh) % 8 == 0)]
    # Force >= 2 grid steps for B == 1 only on chips with 2 TensorCores per device
    # (both grid axes are "parallel"); on single-TC chips the grid is a serial loop
    # and splitting only adds per-step overhead.
    if B == 1 and multi_tc:
        smaller = [t for t in valid if t < Hh]
        if smaller:
            valid = smaller
    fitting = [t for t in valid if est(t) <= budget_bytes]
    small = [t for t in fitting if t <= max_rows]
    pool = small or fitting or [min(valid)]
    best = max(pool)
    # Mild preference for MXU-filling M = TR*Wh (multiple of 256, else 128), never at
    # the cost of more than halving the tile (the kernel is HBM-bound).
    for align in (256, 128):
        cand = [t for t in pool if (t * Wh) % align == 0]
        if cand and 2 * max(cand) >= best:
            best = max(cand)
            break
    return best


def patch_merging(x, gamma, beta, weight, input_resolution, *,
                  matmul_dtype=None, channels_last_outputs=False):
    """x: (B, H*W, C); gamma/beta: (C,); weight: (out_dim, in_dim) as in nn.Linear.

    channels_last_outputs=True returns idx as (B, H/2, W/2, C) and x_fea as
    (B, H, W, C), skipping the NCHW transposes (which re-read/re-write the two largest
    outputs and roughly double end-to-end HBM traffic).  Default keeps the PyTorch
    module contract (NCHW).
    """
    H, W = input_resolution
    B, L, C = x.shape
    assert L == H * W, 'input feature has wrong size'
    assert H % 2 == 0 and W % 2 == 0, f'x size ({H}*{W}) are not even.'
    out_dim = weight.shape[0]
    Hh, Wh = H // 2, W // 2

    # Pad the Linear output dim to a lane-dense multiple of 128 (unmasked vst stores).
    No = ((out_dim + 127) // 128) * 128
    wT = weight.T                                    # (C, out_dim)
    if matmul_dtype is not None:                     # optional bf16 MXU path (accuracy flag)
        wT = wT.astype(matmul_dtype)
    if No != out_dim:
        wT = jnp.pad(wT, ((0, 0), (0, No - out_dim)))

    x_isz = jnp.dtype(x.dtype).itemsize
    w_isz = jnp.dtype(wT.dtype).itemsize
    budget, vmem_limit, multi_tc = _device_params()
    TR = _choose_rows_per_step(B, Hh, Wh, C, No, x_isz, w_isz, budget, multi_tc)

    xv = x.reshape(B, H, Wh, 2 * C)                  # free view: lanes = column pair * C
    g2 = gamma.reshape(1, C)
    b2 = beta.reshape(1, C)

    kernel = functools.partial(_patch_merging_kernel, W, C, TR)

    # Advisory cost so XLA schedules the call sensibly vs. the surrounding reshapes.
    cost = pl.CostEstimate(
        flops=2 * B * Hh * Wh * C * out_dim + 12 * B * H * W * C,
        transcendentals=B * H * W,
        bytes_accessed=(2 * B * H * W * C * x_isz            # x in + fea out
                        + B * Hh * Wh * C * 4                # idx out
                        + B * Hh * Wh * No * x_isz           # linear out
                        + C * No * w_isz + 2 * C * 4))       # weight + gamma/beta

    out, idx, fea = pl.pallas_call(
        kernel,
        grid=(B, Hh // TR),
        in_specs=[
            pl.BlockSpec((None, 2 * TR, Wh, 2 * C), lambda b, r: (b, r, 0, 0)),
            pl.BlockSpec((1, C), lambda b, r: (0, 0)),
            pl.BlockSpec((1, C), lambda b, r: (0, 0)),
            pl.BlockSpec((C, No), lambda b, r: (0, 0)),
        ],
        out_specs=(
            pl.BlockSpec((None, TR * Wh, No), lambda b, r: (b, r, 0)),
            pl.BlockSpec((None, TR * Wh, C), lambda b, r: (b, r, 0)),
            pl.BlockSpec((None, 2 * TR, Wh, 2 * C), lambda b, r: (b, r, 0, 0)),
        ),
        out_shape=(
            jax.ShapeDtypeStruct((B, Hh * Wh, No), x.dtype),
            jax.ShapeDtypeStruct((B, Hh * Wh, C), jnp.int32),
            jax.ShapeDtypeStruct((B, H, Wh, 2 * C), x.dtype),
        ),
        compiler_params=pltpu.CompilerParams(
            dimension_semantics=("parallel", "parallel"),
            vmem_limit_bytes=vmem_limit),
        cost_estimate=cost,
    )(xv, g2, b2, wT)

    x_out = out if No == out_dim else out[:, :, :out_dim]
    if channels_last_outputs:
        return x_out, [idx.reshape(B, Hh, Wh, C)], [fea.reshape(B, H, W, C)]
    # NCHW per the PyTorch module contract; these XLA transposes re-read and re-write
    # the two largest outputs (~doubles HBM traffic) -- prefer channels_last_outputs
    # when the consumer accepts channels-last.
    idx_nchw = idx.reshape(B, Hh, Wh, C).transpose(0, 3, 1, 2)        # (B, C, H/2, W/2)
    x_fea_nchw = fea.reshape(B, H, W, C).transpose(0, 3, 1, 2)        # (B, C, H, W)
    return x_out, [idx_nchw], [x_fea_nchw]


if __name__ == "__main__":
    # Shapes consistent with the stage-3 PatchMerging of ViTAE_noRC_MaxPooling_basic
    # (in_dim=128 -> out_dim=256) at a small 16x16 resolution.
    B, H, W, in_dim, out_dim = 2, 16, 16, 128, 256
    key = jax.random.PRNGKey(0)
    k1, k2, k3, k4 = jax.random.split(key, 4)
    x = jax.random.normal(k1, (B, H * W, in_dim), jnp.float32)
    gamma = 1.0 + 0.1 * jax.random.normal(k2, (in_dim,), jnp.float32)
    beta = 0.1 * jax.random.normal(k3, (in_dim,), jnp.float32)
    weight = jax.random.normal(k4, (out_dim, in_dim), jnp.float32) / jnp.sqrt(
        jnp.float32(in_dim))

    x_out, (idx,), (x_fea,) = patch_merging(x, gamma, beta, weight, (H, W))
    jax.block_until_ready(x_out)
    jax.block_until_ready(idx)
    jax.block_until_ready(x_fea)

    # Pure-JAX reference mirroring the PyTorch forward.
    mean = x.mean(-1, keepdims=True)
    var = ((x - mean) ** 2).mean(-1, keepdims=True)
    xn = (x - mean) / jnp.sqrt(var + 1e-5) * gamma + beta
    fea_ref = xn.reshape(B, H, W, in_dim).transpose(0, 3, 1, 2)       # NCHW
    xr = fea_ref.reshape(B, in_dim, H // 2, 2, W // 2, 2)
    cand = jnp.stack([xr[:, :, :, 0, :, 0], xr[:, :, :, 0, :, 1],
                      xr[:, :, :, 1, :, 0], xr[:, :, :, 1, :, 1]], axis=-1)
    a = jnp.argmax(cand, axis=-1)
    dh, dw = a // 2, a % 2
    ii = jnp.arange(H // 2)[:, None]
    jj = jnp.arange(W // 2)[None, :]
    idx_ref = (2 * ii + dh) * W + 2 * jj + dw
    pooled = cand.max(-1)                                             # (B,C,H/2,W/2)
    out_ref = pooled.transpose(0, 2, 3, 1).reshape(B, -1, in_dim) @ weight.T

    assert jnp.allclose(x_fea, fea_ref, atol=1e-5, rtol=1e-5)
    # Compare argmax indices only where the top-2 window gap is decisive (avoids
    # flakiness from last-bit f32 summation-order differences in LayerNorm).
    cs = jnp.sort(cand, axis=-1)
    decisive = (cs[..., -1] - cs[..., -2]) > 1e-5
    assert bool(jnp.all(jnp.where(decisive, idx == idx_ref.astype(jnp.int32), True)))
    assert jnp.allclose(x_out, out_ref, atol=1e-4, rtol=1e-4)
    print("KERNEL_OK")
</pallas_src>

<mosaic_0001>
module attributes {stable_mosaic.version = 11 : i64} {
  func.func @_patch_merging_kernel(%arg0: i32, %arg1: i32, %arg2: memref<1x16x8x256xf32, #tpu.memory_space<vmem>>, %arg3: memref<1x128xf32, #tpu.memory_space<vmem>>, %arg4: memref<1x128xf32, #tpu.memory_space<vmem>>, %arg5: memref<128x256xf32, #tpu.memory_space<vmem>>, %arg6: memref<1x64x256xf32, #tpu.memory_space<vmem>>, %arg7: memref<1x64x128xi32, #tpu.memory_space<vmem>>, %arg8: memref<1x16x8x256xf32, #tpu.memory_space<vmem>>) attributes {dimension_semantics = [#tpu.dimension_semantics<parallel>, #tpu.dimension_semantics<parallel>], iteration_bounds = array<i64: 2, 1>, scalar_prefetch = 0 : i64, scratch_operands = 0 : i64, tpu.core_type = #tpu.core_type<tc>, window_params = [{transform_indices = @transform_0, window_bounds = array<i64: 1, 16, 8, 256>}, {pipeline_mode = #tpu.pipeline_mode<synchronous>, transform_indices = @transform_1, window_bounds = array<i64: 1, 128>}, {pipeline_mode = #tpu.pipeline_mode<synchronous>, transform_indices = @transform_2, window_bounds = array<i64: 1, 128>}, {pipeline_mode = #tpu.pipeline_mode<synchronous>, transform_indices = @transform_3, window_bounds = array<i64: 128, 256>}, {transform_indices = @transform_4, window_bounds = array<i64: 1, 64, 256>}, {transform_indices = @transform_5, window_bounds = array<i64: 1, 64, 128>}, {transform_indices = @transform_6, window_bounds = array<i64: 1, 16, 8, 256>}]} {
    %c0 = arith.constant 0 : index
    %c0_0 = arith.constant 0 : index
    %0 = vector.load %arg3[%c0, %c0_0] : memref<1x128xf32, #tpu.memory_space<vmem>>, vector<1x128xf32>
    %1 = vector.shape_cast %0 : vector<1x128xf32> to vector<1x1x128xf32>
    %c0_1 = arith.constant 0 : index
    %c0_2 = arith.constant 0 : index
    %2 = vector.load %arg4[%c0_1, %c0_2] : memref<1x128xf32, #tpu.memory_space<vmem>>, vector<1x128xf32>
    %3 = vector.shape_cast %2 : vector<1x128xf32> to vector<1x1x128xf32>
    %c0_3 = arith.constant 0 : index
    %c0_4 = arith.constant 0 : index
    %c0_5 = arith.constant 0 : index
    %c0_6 = arith.constant 0 : index
    %4 = vector.load %arg2[%c0_3, %c0_4, %c0_5, %c0_6] : memref<1x16x8x256xf32, #tpu.memory_space<vmem>>, vector<1x16x8x128xf32>
    %5 = vector.shape_cast %4 : vector<1x16x8x128xf32> to vector<16x8x128xf32>
    %cst = arith.constant dense<0.000000e+00> : vector<16x8xf32>
    %6 = vector.multi_reduction <add>, %5, %cst [2] : vector<16x8x128xf32> to vector<16x8xf32>
    %7 = vector.shape_cast %6 : vector<16x8xf32> to vector<16x8x1xf32>
    %cst_7 = arith.constant 1.280000e+02 : f32
    %8 = vector.broadcast %cst_7 : f32 to vector<16x8x1xf32>
    %9 = arith.divf %7, %8 : vector<16x8x1xf32>
    %10 = vector.broadcast %9 : vector<16x8x1xf32> to vector<16x8x128xf32>
    %11 = arith.subf %5, %10 : vector<16x8x128xf32>
    %12 = arith.mulf %11, %11 : vector<16x8x128xf32>
    %cst_8 = arith.constant dense<0.000000e+00> : vector<16x8xf32>
    %13 = vector.multi_reduction <add>, %12, %cst_8 [2] : vector<16x8x128xf32> to vector<16x8xf32>
    %14 = vector.shape_cast %13 : vector<16x8xf32> to vector<16x8x1xf32>
    %cst_9 = arith.constant 1.280000e+02 : f32
    %15 = vector.broadcast %cst_9 : f32 to vector<16x8x1xf32>
    %16 = arith.divf %14, %15 : vector<16x8x1xf32>
    %17 = vector.broadcast %9 : vector<16x8x1xf32> to vector<16x8x128xf32>
    %18 = arith.subf %5, %17 : vector<16x8x128xf32>
    %cst_10 = arith.constant 9.99999974E-6 : f32
    %19 = vector.broadcast %cst_10 : f32 to vector<16x8x1xf32>
    %20 = arith.addf %16, %19 : vector<16x8x1xf32>
    %21 = math.rsqrt %20 : vector<16x8x1xf32>
    %22 = vector.broadcast %21 : vector<16x8x1xf32> to vector<16x8x128xf32>
    %23 = arith.mulf %18, %22 : vector<16x8x128xf32>
    %24 = vector.broadcast %1 : vector<1x1x128xf32> to vector<16x8x128xf32>
    %25 = arith.mulf %23, %24 : vector<16x8x128xf32>
    %26 = vector.broadcast %3 : vector<1x1x128xf32> to vector<16x8x128xf32>
    %27 = arith.addf %25, %26 : vector<16x8x128xf32>
    %c0_11 = arith.constant 0 : index
    %c0_12 = arith.constant 0 : index
    %c0_13 = arith.constant 0 : index
    %c128 = arith.constant 128 : index
    %28 = vector.load %arg2[%c0_11, %c0_12, %c0_13, %c128] : memref<1x16x8x256xf32, #tpu.memory_space<vmem>>, vector<1x16x8x128xf32>
    %29 = vector.shape_cast %28 : vector<1x16x8x128xf32> to vector<16x8x128xf32>
    %cst_14 = arith.constant dense<0.000000e+00> : vector<16x8xf32>
    %30 = vector.multi_reduction <add>, %29, %cst_14 [2] : vector<16x8x128xf32> to vector<16x8xf32>
    %31 = vector.shape_cast %30 : vector<16x8xf32> to vector<16x8x1xf32>
    %cst_15 = arith.constant 1.280000e+02 : f32
    %32 = vector.broadcast %cst_15 : f32 to vector<16x8x1xf32>
    %33 = arith.divf %31, %32 : vector<16x8x1xf32>
    %34 = vector.broadcast %33 : vector<16x8x1xf32> to vector<16x8x128xf32>
    %35 = arith.subf %29, %34 : vector<16x8x128xf32>
    %36 = arith.mulf %35, %35 : vector<16x8x128xf32>
    %cst_16 = arith.constant dense<0.000000e+00> : vector<16x8xf32>
    %37 = vector.multi_reduction <add>, %36, %cst_16 [2] : vector<16x8x128xf32> to vector<16x8xf32>
    %38 = vector.shape_cast %37 : vector<16x8xf32> to vector<16x8x1xf32>
    %cst_17 = arith.constant 1.280000e+02 : f32
    %39 = vector.broadcast %cst_17 : f32 to vector<16x8x1xf32>
    %40 = arith.divf %38, %39 : vector<16x8x1xf32>
    %41 = vector.broadcast %33 : vector<16x8x1xf32> to vector<16x8x128xf32>
    %42 = arith.subf %29, %41 : vector<16x8x128xf32>
    %cst_18 = arith.constant 9.99999974E-6 : f32
    %43 = vector.broadcast %cst_18 : f32 to vector<16x8x1xf32>
    %44 = arith.addf %40, %43 : vector<16x8x1xf32>
    %45 = math.rsqrt %44 : vector<16x8x1xf32>
    %46 = vector.broadcast %45 : vector<16x8x1xf32> to vector<16x8x128xf32>
    %47 = arith.mulf %42, %46 : vector<16x8x128xf32>
    %48 = vector.broadcast %1 : vector<1x1x128xf32> to vector<16x8x128xf32>
    %49 = arith.mulf %47, %48 : vector<16x8x128xf32>
    %50 = vector.broadcast %3 : vector<1x1x128xf32> to vector<16x8x128xf32>
    %51 = arith.addf %49, %50 : vector<16x8x128xf32>
    %52 = tpu.concatenate %27, %51 in 2 : vector<16x8x128xf32>, vector<16x8x128xf32> -> vector<16x8x256xf32>
    %c0_19 = arith.constant 0 : index
    %c0_20 = arith.constant 0 : index
    %c0_21 = arith.constant 0 : index
    %c0_22 = arith.constant 0 : index
    %53 = vector.load %arg8[%c0_19, %c0_20, %c0_21, %c0_22] : memref<1x16x8x256xf32, #tpu.memory_space<vmem>>, vector<1x16x8x256xf32>
    %54 = vector.shape_cast %53 : vector<1x16x8x256xf32> to vector<16x8x256xf32>
    %55 = vector.shape_cast %52 : vector<16x8x256xf32> to vector<1x16x8x256xf32>
    tpu.vector_store %arg8[%c0_19, %c0_20, %c0_21, %c0_22], %55 {strides = array<i32>} : memref<1x16x8x256xf32, #tpu.memory_space<vmem>>, vector<1x16x8x256xf32>,
    %56 = vector.shape_cast %27 : vector<16x8x128xf32> to vector<8x2x8x128xf32>
    %57 = vector.shape_cast %51 : vector<16x8x128xf32> to vector<8x2x8x128xf32>
    %58 = vector.extract_strided_slice %56 {offsets = [0, 0, 0, 0], sizes = [8, 1, 8, 128], strides = [1, 1, 1, 1]} : vector<8x2x8x128xf32> to vector<8x1x8x128xf32>
    %59 = vector.shape_cast %58 : vector<8x1x8x128xf32> to vector<8x8x128xf32>
    %60 = vector.extract_strided_slice %56 {offsets = [0, 1, 0, 0], sizes = [8, 1, 8, 128], strides = [1, 1, 1, 1]} : vector<8x2x8x128xf32> to vector<8x1x8x128xf32>
    %61 = vector.shape_cast %60 : vector<8x1x8x128xf32> to vector<8x8x128xf32>
    %62 = vector.extract_strided_slice %57 {offsets = [0, 0, 0, 0], sizes = [8, 1, 8, 128], strides = [1, 1, 1, 1]} : vector<8x2x8x128xf32> to vector<8x1x8x128xf32>
    %63 = vector.shape_cast %62 : vector<8x1x8x128xf32> to vector<8x8x128xf32>
    %64 = vector.extract_strided_slice %57 {offsets = [0, 1, 0, 0], sizes = [8, 1, 8, 128], strides = [1, 1, 1, 1]} : vector<8x2x8x128xf32> to vector<8x1x8x128xf32>
    %65 = vector.shape_cast %64 : vector<8x1x8x128xf32> to vector<8x8x128xf32>
    %66 = arith.cmpf ogt, %63, %59 : vector<8x8x128xf32>
    %67 = arith.select %66, %63, %59 : vector<8x8x128xi1>, vector<8x8x128xf32>
    %68 = arith.cmpf ogt, %65, %61 : vector<8x8x128xf32>
    %69 = arith.select %68, %65, %61 : vector<8x8x128xi1>, vector<8x8x128xf32>
    %70 = arith.cmpf ogt, %69, %67 : vector<8x8x128xf32>
    %71 = arith.select %70, %69, %67 : vector<8x8x128xi1>, vector<8x8x128xf32>
    %72 = arith.extui %68 : vector<8x8x128xi1> to vector<8x8x128xi32>
    %73 = arith.extui %66 : vector<8x8x128xi1> to vector<8x8x128xi32>
    %74 = arith.select %70, %72, %73 : vector<8x8x128xi1>, vector<8x8x128xi32>
    %75 = arith.extui %70 : vector<8x8x128xi1> to vector<8x8x128xi32>
    %76 = tpu.iota {dimensions = array<i32: 0>} : vector<8x8x128xi32>
    %77 = tpu.iota {dimensions = array<i32: 1>} : vector<8x8x128xi32>
    %c8_i32 = arith.constant 8 : i32
    %78 = arith.muli %arg1, %c8_i32 : i32
    %79 = vector.broadcast %78 : i32 to vector<8x8x128xi32>
    %80 = arith.addi %79, %76 : vector<8x8x128xi32>
    %c2_i32 = arith.constant 2 : i32
    %81 = vector.broadcast %c2_i32 : i32 to vector<8x8x128xi32>
    %82 = arith.muli %81, %80 : vector<8x8x128xi32>
    %83 = arith.addi %82, %75 : vector<8x8x128xi32>
    %c16_i32 = arith.constant 16 : i32
    %84 = vector.broadcast %c16_i32 : i32 to vector<8x8x128xi32>
    %85 = arith.muli %83, %84 : vector<8x8x128xi32>
    %c2_i32_23 = arith.constant 2 : i32
    %86 = vector.broadcast %c2_i32_23 : i32 to vector<8x8x128xi32>
    %87 = arith.muli %86, %77 : vector<8x8x128xi32>
    %88 = arith.addi %85, %87 : vector<8x8x128xi32>
    %89 = arith.addi %88, %74 : vector<8x8x128xi32>
    %90 = vector.shape_cast %89 : vector<8x8x128xi32> to vector<64x128xi32>
    %c0_24 = arith.constant 0 : index
    %c0_25 = arith.constant 0 : index
    %c0_26 = arith.constant 0 : index
    %91 = vector.load %arg7[%c0_24, %c0_25, %c0_26] : memref<1x64x128xi32, #tpu.memory_space<vmem>>, vector<1x64x128xi32>
    %92 = vector.shape_cast %91 : vector<1x64x128xi32> to vector<64x128xi32>
    %93 = vector.shape_cast %90 : vector<64x128xi32> to vector<1x64x128xi32>
    tpu.vector_store %arg7[%c0_24, %c0_25, %c0_26], %93 {strides = array<i32>} : memref<1x64x128xi32, #tpu.memory_space<vmem>>, vector<1x64x128xi32>,
    %94 = vector.shape_cast %71 : vector<8x8x128xf32> to vector<64x128xf32>
    %c0_27 = arith.constant 0 : index
    %c0_28 = arith.constant 0 : index
    %95 = vector.load %arg5[%c0_27, %c0_28] : memref<128x256xf32, #tpu.memory_space<vmem>>, vector<128x256xf32>
    %cst_29 = arith.constant dense<0.000000e+00> : vector<64x256xf32>
    %96 = tpu.matmul %94, %95, %cst_29 {dimension_numbers = #tpu.dot_dimension_numbers<[1], [0], [0], [1], [0, 0, 1, 1], [], []>} : vector<64x128xf32>, vector<128x256xf32>, vector<64x256xf32> -> vector<64x256xf32>
    %c0_30 = arith.constant 0 : index
    %c0_31 = arith.constant 0 : index
    %c0_32 = arith.constant 0 : index
    %97 = vector.load %arg6[%c0_30, %c0_31, %c0_32] : memref<1x64x256xf32, #tpu.memory_space<vmem>>, vector<1x64x256xf32>
    %98 = vector.shape_cast %97 : vector<1x64x256xf32> to vector<64x256xf32>
    %99 = vector.shape_cast %96 : vector<64x256xf32> to vector<1x64x256xf32>
    tpu.vector_store %arg6[%c0_30, %c0_31, %c0_32], %99 {strides = array<i32>} : memref<1x64x256xf32, #tpu.memory_space<vmem>>, vector<1x64x256xf32>,
    return
  }
  func.func @transform_0(%arg0: i32, %arg1: i32) -> (i32, i32, i32, i32) {
    %c0_i32 = arith.constant 0 : i32
    %c0_i32_0 = arith.constant 0 : i32
    %c0_i32_1 = arith.constant 0 : i32
    return %arg0, %arg1, %c0_i32, %c0_i32_0 : i32, i32, i32, i32
  }
  func.func @transform_1(%arg0: i32, %arg1: i32) -> (i32, i32) {
    %c0_i32 = arith.constant 0 : i32
    %c0_i32_0 = arith.constant 0 : i32
    %c0_i32_1 = arith.constant 0 : i32
    return %c0_i32, %c0_i32_0 : i32, i32
  }
  func.func @transform_2(%arg0: i32, %arg1: i32) -> (i32, i32) {
    %c0_i32 = arith.constant 0 : i32
    %c0_i32_0 = arith.constant 0 : i32
    %c0_i32_1 = arith.constant 0 : i32
    return %c0_i32, %c0_i32_0 : i32, i32
  }
  func.func @transform_3(%arg0: i32, %arg1: i32) -> (i32, i32) {
    %c0_i32 = arith.constant 0 : i32
    %c0_i32_0 = arith.constant 0 : i32
    %c0_i32_1 = arith.constant 0 : i32
    return %c0_i32, %c0_i32_0 : i32, i32
  }
  func.func @transform_4(%arg0: i32, %arg1: i32) -> (i32, i32, i32) {
    %c0_i32 = arith.constant 0 : i32
    %c0_i32_0 = arith.constant 0 : i32
    return %arg0, %arg1, %c0_i32 : i32, i32, i32
  }
  func.func @transform_5(%arg0: i32, %arg1: i32) -> (i32, i32, i32) {
    %c0_i32 = arith.constant 0 : i32
    %c0_i32_0 = arith.constant 0 : i32
    return %arg0, %arg1, %c0_i32 : i32, i32, i32
  }
  func.func @transform_6(%arg0: i32, %arg1: i32) -> (i32, i32, i32, i32) {
    %c0_i32 = arith.constant 0 : i32
    %c0_i32_0 = arith.constant 0 : i32
    %c0_i32_1 = arith.constant 0 : i32
    return %arg0, %arg1, %c0_i32, %c0_i32_0 : i32, i32, i32, i32
  }
}

</mosaic_0001>

<bundles_post_ra>
// kernel: tpu_custom_call.1
= control target key start
LH: loop header
LB: loop body
LE: loop exit
PB: predicated region body
PF: predicated region fallthrough
CT: control target
= control target key end

     0   :  { %s2703_s0 = inlined_call_operand.hbm [shape: f32[2,16,8,256], index: 0, kind: input, shape index: {}]   ;;  %s2704_s1 = inlined_call_operand.vmem [shape: f32[1,128], index: 1, kind: input, shape index: {}]   ;;  %s2705_s2 = inlined_call_operand.vmem [shape: f32[1,128], index: 2, kind: input, shape index: {}]   ;;  %s2706_s3 = inlined_call_operand.hbm [shape: f32[128,256], index: 3, kind: input, shape index: {}]   ;;  %s2707_s4 = inlined_call_operand.hbm [shape: f32[2,64,256], index: 4, kind: output, shape index: {0}]   ;;  %s2708_s5 = inlined_call_operand.hbm [shape: s32[2,64,128], index: 5, kind: output, shape index: {1}]   ;;  %s2709_s6 = inlined_call_operand.hbm [shape: f32[2,16,8,256], index: 6, kind: output, shape index: {2}]  }
   0x1   :  { %2716 = sst [smem:[#allocation15_spill]] %s2703_s0 }
   0x2   :  { %12 = vsyncpa [#allocation3], 0 }
   0x3   :  { %14 = vsyncpa [#allocation3 + $0x1], 0 }
   0x4   :  { %15 = vsyncpa [#allocation6], 0 }
   0x5   :  { %16 = vsyncpa [#allocation4], 0 }
   0x6   :  { %18 = vsyncpa [#allocation4 + $0x1], 0 }
   0x7   :  { %19 = vsyncpa [#allocation9], 0 }
   0x8   :  { %21 = vsyncpa [#allocation9 + $0x1], 0  ;;  %s1842_s21 = smov 0   ;;  %s1844_s22 = smov 0  }
   0x9   :  { %s1846_s23 = smov 0   ;;  %s1848_s24 = smov 0  }
   0xa   :  { %s1850_s25 = smov 0   ;;  %s1852_s26 = smov 0  }
   0xb LB: > { %s1873_s27 = sadd.s32 4294967295, %s1792_s26   ;;  %s2713_s28 = sadd.s32 4294967294, %s1792_s26   ;;  %s1792_s26 = sphi %s1852_s26, %s27_s26   ;;  %s1788_s25 = sphi %s1850_s25, %s2739_s25   ;;  %s1784_s24 = sphi %s1848_s24, %s2738_s24   ;;  %s1780_s23 = sphi %s1846_s23, %s2737_s23   ;;  %s1776_s22 = sphi %s1844_s22, %s2736_s22   ;;  %s1772_s21 = sphi %s1842_s21, %s2735_s21  }
   0xc   : > { %p61_p0 = scmp.ne.s32.totalorder %s1776_s22, %s1772_s21  ;;  %p2710_p1 = scmp.eq.s32.totalorder %s1873_s27, 0 }
   0xd   : > { %p156_p3 = scmp.eq.s32.totalorder %s2713_s28, 1  ;;  %p1356_p5 = scmp.ge.s32.totalorder %s1792_s26, 1 }
   0xe   : > { %p1884_p4 = por %p2710_p1, %p61_p0  ;;  %p219_p7 = scmp.lt.s32.totalorder %s1792_s26, 3 }
   0xf   : > { %p1889_p6 = por %p156_p3, %p61_p0  ;;  %s1794_s8 = smov [#allocation5]  }
  0x10   : > { %s2717_s29 = scalar_select %p1884_p4, 1, 0 }
  0x11   : > { %s2718_s30 = scalar_select %p1889_p6, 1, 0 }
  0x12   : > { %p1894_p8 = pnand %p1356_p5, %p219_p7  ;;  %s237_s9 = sshll.u32 %s1794_s8, 4  ;;  %s238_s9 = int_to_ptr.vmem [resolvable:$true] %s237_s9 }
  0x13   : > { %s39_s11 = sadd.s32 1, %s1788_s25  ;;  %s1588_s14 = scalar_lea.hbm %s2706_s3, 4096 }
  0x14   : > { %s2719_s7 = scalar_select %p1894_p8, 1, 0 }
  0x15   : > { %p1445_p9 = pneg %p1894_p8  ;;  %p1589_p12 = scmp.ne.s32.totalorder %s2706_s3, %s1588_s14 }
  0x16   : > { %p1595_p5 = scmp.lt.u32.totalorder %s1588_s14, %s2706_s3 }
  0x17   : > { %p1903_p11 = pnand %p1445_p9, %p2710_p1 }
  0x19   : > { %p1590_p13 = pneg %p1903_p11 }
  0x1b   : > { %p1591_p0 = pnand %p1590_p13, %p1589_p12 }
  0x1d   : > { %p1592_p3 = pneg %p1591_p0 }
  0x1f   : > { %p1597_p7 = pnand %p1595_p5, %p1592_p3 }
  0x21   : > { %1600 = shalt.err (!%p1597_p7)
}
  0x22   : > { %s1601_s19 = scalar_lea.vmem %s238_s9, 4096  ;;  %p1609_p2 = scmp.lt.s32.totalorder %s238_s9, %s238_s9 }
  0x23   : > { %p1602_p9 = scmp.ne.s32.totalorder %s238_s9, %s1601_s19  ;;  %p1610_p6 = scmp.lt.s32.totalorder %s1601_s19, %s1601_s19 }
  0x25   : > { %p1604_p10 = pnand %p1602_p9, %p1590_p13  ;;  %p1611_p4 = por %p1610_p6, %p1609_p2 }
  0x27   : > { %p1605_p1 = pneg %p1604_p10 }
  0x29   : > { %p1612_p8 = pnand %p1611_p4, %p1605_p1 }
  0x2b   : > { %1615 = shalt.err (!%p1612_p8)
}
  0x2c   : > { %s2714_s20 = smov 256   ;;  %s2715_s8 = smov 16  }
  0x2d   : > { %1448 = dma.hbm_to_vmem [thread:$0]  (!%p1903_p11), %s2706_s3, 4096, %s238_s9, [#allocation6], %s2714_s20, %s2714_s20, %s2715_s8  }
  0x2e   : > { %p41_p1 = scmp.ge.s32.totalorder %s39_s11, 2  ;;  %s48_s14 = sadd.s32 1, %s1780_s23 }
  0x2f   : > { %p55_p2 = scmp.ne.s32.totalorder %s1780_s23, %s1776_s22  ;;  %p56_p4 = scmp.eq.s32.totalorder %s1792_s26, 0 }
  0x30   : > { %s2741_s11 = smov (%p41_p1, %s39_s11), 0  ;;  %p2722_p8 = scmp.eq.s32.totalorder %s1873_s27, 1 }
  0x31   : > { %p1933_p6 = por %p56_p4, %p55_p2  ;;  %s43_s16 = ssub.s32 %s1788_s25, %s2741_s11 }
  0x32   : > { %p1939_p10 = por %p2722_p8, %p55_p2  ;;  %p1464_p12 = scmp.lt.s32.totalorder %s1792_s26, 2 }
  0x33   : > { %p46_p11 = scmp.eq.s32.totalorder %s43_s16, 0  ;;  %s251_s9 = sand.u32 1, %s1780_s23  }
  0x34   : > { %s1359_s17 = sshll.u32 %s251_s9, 8  ;;  %s1381_s19 = sshll.u32 %s1788_s25, 12 }
  0x35   : > { %s1948_s18 = scalar_select %p46_p11, %s1780_s23, %s48_s14  }
  0x36   : > { %s2724_s0 = sld [smem:[#allocation15_spill]]  ;;  %s255_s20 = scalar_lea.vmem [#allocation2], %s1359_s17 }
  0x37   : > { %s265_s8 = sshll.u32 %s255_s20, 4  ;;  %p1960_p13 = pnand %p1464_p12, %p1933_p6  ;;  %s1956_s8 = int_to_ptr.vmem [resolvable:$true] %s265_s8 }
  0x38   : > { %s1964_s14 = scalar_lea.sflag [#allocation3], %s251_s9 }
  0x39   : > { %p1618_p3 = pneg %p1960_p13 }
  0x3c   : > { %s1954_s28 = scalar_lea.hbm %s2724_s0, %s1381_s19  ;;  %s1621_s15 = scalar_lea.hbm %s2724_s0, 8192 }
  0x3d   : > { %s1616_s12 = scalar_lea.hbm %s1954_s28, 4096  ;;  %p1622_p9 = scmp.lt.u32.totalorder %s1954_s28, %s2724_s0 }
  0x3e   : > { %p1617_p0 = scmp.ne.s32.totalorder %s1954_s28, %s1616_s12  ;;  %p1623_p1 = scmp.lt.u32.totalorder %s1621_s15, %s1616_s12 }
  0x3f   : > { %p1625_p4 = scmp.lt.u32.totalorder %s1616_s12, %s1954_s28 }
  0x40   : > { %p1619_p5 = pnand %p1618_p3, %p1617_p0  ;;  %p1624_p2 = por %p1623_p1, %p1622_p9 }
  0x42   : > { %p1620_p7 = pneg %p1619_p5  ;;  %p1626_p6 = por %p1625_p4, %p1624_p2 }
  0x44   : > { %p1627_p8 = pnand %p1626_p6, %p1620_p7 }
  0x46   : > { %1630 = shalt.err (!%p1627_p8)
}
  0x47   : > { %s1631_s9 = scalar_lea.vmem %s1956_s8, 4096  ;;  %s1797_s20 = smov [#allocation2]  }
  0x48   : > { %p1632_p12 = scmp.ne.s32.totalorder %s1956_s8, %s1631_s9  ;;  %s1636_s17 = sshll.u32 %s1797_s20, 4  ;;  %s1637_s17 = int_to_ptr.vmem [resolvable:$false] %s1636_s17 }
  0x49   : > { %s1638_s19 = scalar_lea.vmem %s1637_s17, 8192  ;;  %p1639_p5 = scmp.lt.s32.totalorder %s1956_s8, %s1637_s17 }
  0x4a   : > { %p1634_p11 = pnand %p1632_p12, %p1618_p3  ;;  %p1640_p9 = scmp.lt.s32.totalorder %s1638_s19, %s1631_s9 }
  0x4c   : > { %p1635_p0 = pneg %p1634_p11  ;;  %p1641_p1 = por %p1640_p9, %p1639_p5 }
  0x4e   : > { %p1642_p2 = pnand %p1641_p1, %p1635_p0 }
  0x50   : > { %1645 = shalt.err (!%p1642_p2)
}
  0x51   : > { %s2726_s12 = smov 16   ;;  %s2727_s15 = smov 256  }
  0x52   : > { %1452 = dma.hbm_to_vmem [thread:$0]  (!%p1960_p13), %s1954_s28, 4096, %s1956_s8, %s1964_s14, %s2727_s15, %s2727_s15, %s2726_s12  }
  0x53   : > { %p2728_p3 = scmp.ne.s32.totalorder %s2719_s7, 0 }
  0x54   : > { %s1998_s13 = sand.u32 (!%p2728_p3), 1, %s1776_s22   ;;  %p2729_p7 = scmp.ne.s32.totalorder (!%p2728_p3), %s2717_s29, 0 }
  0x55   : > { %277 = sbr.rel (%p2728_p3) target bundleno = 704 (0x2c0), region = 36  ;;  %s1363_s9 = sshll.u32 (!%p2728_p3), %s1998_s13, 8 }
  0x56   : > { %s280_s20 = scalar_lea.sflag (!%p2728_p3), [#allocation3], %s1998_s13  ;;  %s2004_s16 = scalar_lea.vmem (!%p2728_p3), [#allocation2], %s1363_s9 }
  0x5c   : > { %1755 = dma.done.wait (%p2729_p7), %s280_s20, 4096  }
  0x5d   : > { %1757 = vsyncadd (%p2729_p7), %s280_s20, 4294963200  ;;  %p2730_p13 = scmp.eq.s32.totalorder %s1873_s27, 0 }
  0x5f   : > { %1759 = dma.done.wait (%p2730_p13), [#allocation6], 4096   ;;  %p2731_p4 = pmov %p2730_p13 }
  0x60   : > { %v2015_v0 = vld [vmem:[%s2004_s16] sm:$0xff]  ;;  %v2023_v2 = vld [vmem:[%s2004_s16 + $0x10] sm:$0xff]  ;;  %v2031_v4 = vld [vmem:[%s2004_s16 + $0x8] sm:$0xff]  ;;  %s2322_s14 = scalar_lea.vmem [#allocation10], %s1363_s9  ;;  %s1366_s17 = sshll.u32 %s1998_s13, 6 }
  0x61   : > { %1761 = vsyncadd (%p2731_p4), [#allocation6], 4294963200  ;;  %v2018_v1 = vld [vmem:[%s2004_s16 + $0x80] sm:$0xff]  ;;  %348 = vadd.xlane.f32.xlu0 %v2015_v0  ;;  %v2026_v3 = vld [vmem:[%s2004_s16 + $0x90] sm:$0xff]  ;;  %s2383_s19 = scalar_lea.vmem [#allocation8], %s1366_s17  ;;  %s1131_s12 = sand.u32 1, %s1873_s27  }
  0x62   : > { %364 = vadd.xlane.f32.xlu1 %v2018_v1  ;;  %v2034_v5 = vld [vmem:[%s2004_s16 + $0x18] sm:$0xff]  ;;  %v2039_v6 = vld [vmem:[%s2004_s16 + $0x88] sm:$0xff]  ;;  %v2047_v8 = vld [vmem:[%s2004_s16 + $0x20] sm:$0xff]  ;;  %s1383_s15 = sshll.u32 %s1784_s24, 10  ;;  %s1171_s28 = sshll.u32 %s2383_s19, 4  ;;  %s2563_s28 = int_to_ptr.vmem [resolvable:$true] %s1171_s28 }
  0x63   : > { %v2042_v7 = vld [vmem:[%s2004_s16 + $0x98] sm:$0xff]  ;;  %v2050_v9 = vld [vmem:[%s2004_s16 + $0x30] sm:$0xff]  ;;  %v2055_v10 = vld [vmem:[%s2004_s16 + $0xa0] sm:$0xff]  ;;  %s2565_s29 = scalar_lea.sflag [#allocation9], %s1131_s12  ;;  %s1646_s7 = scalar_lea.vmem %s2563_s28, 1024 }
  0x64   : > { %v2058_v11 = vld [vmem:[%s2004_s16 + $0xb0] sm:$0xff]  ;;  %v2063_v12 = vld [vmem:[%s2004_s16 + $0x28] sm:$0xff]  ;;  %v2066_v13 = vld [vmem:[%s2004_s16 + $0x38] sm:$0xff]  ;;  %p1647_p6 = scmp.ne.s32.totalorder %s2563_s28, %s1646_s7  ;;  %s1800_s27 = smov [#allocation8]  }
  0x65   : > { %350 = vadd.xlane.f32.xlu0 %v2023_v2  ;;  %v2071_v14 = vld [vmem:[%s2004_s16 + $0xa8] sm:$0xff]  ;;  %v2074_v15 = vld [vmem:[%s2004_s16 + $0xb8] sm:$0xff]  ;;  %v2079_v16 = vld [vmem:[%s2004_s16 + $0x40] sm:$0xff]  ;;  %s1650_s8 = sshll.u32 %s1800_s27, 4  ;;  %s1651_s8 = int_to_ptr.vmem [resolvable:$false] %s1650_s8 }
  0x66   : > { %366 = vadd.xlane.f32.xlu1 %v2026_v3  ;;  %v2082_v17 = vld [vmem:[%s2004_s16 + $0x50] sm:$0xff]  ;;  %v2087_v18 = vld [vmem:[%s2004_s16 + $0xc0] sm:$0xff]  ;;  %v2095_v20 = vld [vmem:[%s2004_s16 + $0x48] sm:$0xff]  ;;  %p1648_p8 = pnand %p1647_p6, %p1939_p10  ;;  %s1652_s17 = scalar_lea.vmem %s1651_s8, 2048 }
  0x67   : > { %v2090_v19 = vld [vmem:[%s2004_s16 + $0xd0] sm:$0xff]  ;;  %v2098_v21 = vld [vmem:[%s2004_s16 + $0x58] sm:$0xff]  ;;  %v2103_v22 = vld [vmem:[%s2004_s16 + $0xc8] sm:$0xff]  ;;  %p1653_p11 = scmp.lt.s32.totalorder %s2563_s28, %s1651_s8  ;;  %p1654_p0 = scmp.lt.s32.totalorder %s1652_s17, %s1646_s7 }
  0x68   : > { %v2106_v23 = vld [vmem:[%s2004_s16 + $0xd8] sm:$0xff]  ;;  %v2111_v24 = vld [vmem:[%s2004_s16 + $0x60] sm:$0xff]  ;;  %v2114_v25 = vld [vmem:[%s2004_s16 + $0x70] sm:$0xff]  ;;  %p1649_p12 = pneg %p1648_p8 }
  0x69   : > { %585 = vadd.xlane.f32.xlu0 %v2031_v4  ;;  %v2119_v26 = vld [vmem:[%s2004_s16 + $0xe0] sm:$0xff]  ;;  %v2122_v27 = vld [vmem:[%s2004_s16 + $0xf0] sm:$0xff]  ;;  %v2127_v28 = vld [vmem:[%s2004_s16 + $0x68] sm:$0xff]  ;;  %p1655_p5 = por %p1654_p0, %p1653_p11 }
  0x6a   : > { %587 = vadd.xlane.f32.xlu1 %v2034_v5  ;;  %v2130_v29 = vld [vmem:[%s2004_s16 + $0x78] sm:$0xff]  ;;  %v2135_v30 = vld [vmem:[%s2004_s16 + $0xe8] sm:$0xff] }
  0x6b   : > { %v2138_v31 = vld [vmem:[%s2004_s16 + $0xf8] sm:$0xff]  ;;  %s2560_s16 = scalar_lea.hbm %s2708_s5, %s1383_s15  ;;  %p1656_p9 = pnand %p1655_p5, %p1649_p12 }
  0x6d   : > { %601 = vadd.xlane.f32.xlu0 %v2039_v6 }
  0x6e   : > { %603 = vadd.xlane.f32.xlu1 %v2042_v7 }
  0x71   : > { %352 = vadd.xlane.f32.xlu0 %v2047_v8 }
  0x72   : > { %354 = vadd.xlane.f32.xlu1 %v2050_v9 }
  0x75   : > { %368 = vadd.xlane.f32.xlu0 %v2055_v10 }
  0x76   : > { %370 = vadd.xlane.f32.xlu1 %v2058_v11 }
  0x79   : > { %589 = vadd.xlane.f32.xlu0 %v2063_v12 }
  0x7a   : > { %591 = vadd.xlane.f32.xlu1 %v2066_v13 }
  0x7d   : > { %605 = vadd.xlane.f32.xlu0 %v2071_v14 }
  0x7e   : > { %607 = vadd.xlane.f32.xlu1 %v2074_v15 }
  0x81   : > { %356 = vadd.xlane.f32.xlu0 %v2079_v16 }
  0x82   : > { %358 = vadd.xlane.f32.xlu1 %v2082_v17 }
  0x85   : > { %372 = vadd.xlane.f32.xlu0 %v2087_v18 }
  0x86   : > { %374 = vadd.xlane.f32.xlu1 %v2090_v19 }
  0x89   : > { %593 = vadd.xlane.f32.xlu0 %v2095_v20 }
  0x8a   : > { %595 = vadd.xlane.f32.xlu1 %v2098_v21 }
  0x8d   : > { %609 = vadd.xlane.f32.xlu0 %v2103_v22 }
  0x8e   : > { %611 = vadd.xlane.f32.xlu1 %v2106_v23 }
  0x91   : > { %360 = vadd.xlane.f32.xlu0 %v2111_v24 }
  0x92   : > { %362 = vadd.xlane.f32.xlu1 %v2114_v25 }
  0x95   : > { %376 = vadd.xlane.f32.xlu0 %v2119_v26 }
  0x96   : > { %378 = vadd.xlane.f32.xlu1 %v2122_v27 }
  0x99   : > { %597 = vadd.xlane.f32.xlu0 %v2127_v28 }
  0x9a   : > { %599 = vadd.xlane.f32.xlu1 %v2130_v29 }
  0x9d   : > { %613 = vadd.xlane.f32.xlu0 %v2135_v30 }
  0x9e   : > { %615 = vadd.xlane.f32.xlu1 %v2138_v31 }
  0xee   : > { %v349_v32 = vpop.xlane.xlu0 %348 }
  0xef   : > { %v365_v33 = vpop.xlane.xlu1 %364  ;;  %v381_v34 = vmul.f32 0.0078125, %v349_v32 }
  0xf0   : > { %v389_v35 = vmul.f32 0.0078125, %v365_v33 }
  0xf1   : > { %v2143_v36 = vsub.f32 %v2015_v0, %v381_v34 }
  0xf2   : > { %v2146_v37 = vsub.f32 %v2018_v1, %v389_v35  ;;  %v351_v38 = vpop.xlane.xlu0 %350 }
  0xf3   : > { %v367_v39 = vpop.xlane.xlu1 %366  ;;  %v382_v40 = vmul.f32 0.0078125, %v351_v38  ;;  %v413_v41 = vmul.f32 %v2143_v36, %v2143_v36 }
  0xf4   : > { %v390_v42 = vmul.f32 0.0078125, %v367_v39  ;;  %v421_v45 = vmul.f32 %v2146_v37, %v2146_v37 }
  0xf5   : > { %v2151_v43 = vsub.f32 %v2023_v2, %v382_v40  ;;  %429 = vadd.xlane.f32.xlu0 %v413_v41  ;;  %v966_v40 = vld [vmem:[#allocation5 + $0x8] sm:$0xff]  ;;  %v968_v41 = vld [vmem:[#allocation5 + $0x18] sm:$0xff] }
  0xf6   : > { %v2154_v44 = vsub.f32 %v2026_v3, %v390_v42  ;;  %v586_v46 = vpop.xlane.xlu0 %585 }
  0xf7   : > { %v588_v47 = vpop.xlane.xlu1 %587  ;;  %v617_v48 = vmul.f32 0.0078125, %v586_v46  ;;  %v414_v49 = vmul.f32 %v2151_v43, %v2151_v43 }
  0xf8   : > { %v618_v50 = vmul.f32 0.0078125, %v588_v47  ;;  %v422_v53 = vmul.f32 %v2154_v44, %v2154_v44  ;;  %v965_v47 = vld [vmem:[#allocation5] sm:$0xff] }
  0xf9   : > { %v2161_v51 = vsub.f32 %v2031_v4, %v617_v48  ;;  %445 = vadd.xlane.f32.xlu0 %v421_v45  ;;  %431 = vadd.xlane.f32.xlu1 %v414_v49  ;;  %v1385_v48 = vpack.c.bf16 %v968_v41, %v966_v40 }
  0xfa   : > { %v2164_v52 = vsub.f32 %v2034_v5, %v618_v50  ;;  %v602_v54 = vpop.xlane.xlu0 %601 }
  0xfb   : > { %v604_v55 = vpop.xlane.xlu1 %603  ;;  %v625_v56 = vmul.f32 0.0078125, %v602_v54  ;;  %v649_v57 = vmul.f32 %v2161_v51, %v2161_v51  ;;  %1386 = vmatprep.subr.bf16.mxu0 %v1385_v48  ;;  %1417 = vmatprep.subr.bf16.mxu1 %v1385_v48  ;;  %v980_v48 = vld [vmem:[#allocation5 + $0x78] sm:$0xff] }
  0xfc   : > { %v626_v58 = vmul.f32 0.0078125, %v604_v55  ;;  %v650_v61 = vmul.f32 %v2164_v52, %v2164_v52 }
  0xfd   : > { %v2171_v59 = vsub.f32 %v2039_v6, %v625_v56  ;;  %447 = vadd.xlane.f32.xlu1 %v422_v53  ;;  %665 = vadd.xlane.f32.xlu0 %v649_v57  ;;  %v970_v56 = vld [vmem:[#allocation5 + $0x28] sm:$0xff]  ;;  %v972_v57 = vld [vmem:[#allocation5 + $0x38] sm:$0xff] }
  0xfe   : > { %v2174_v60 = vsub.f32 %v2042_v7, %v626_v58  ;;  %v353_v62 = vpop.xlane.xlu0 %352 }
  0xff   : > { %v355_v63 = vpop.xlane.xlu1 %354  ;;  %v383_v0 = vmul.f32 0.0078125, %v353_v62  ;;  %v657_v1 = vmul.f32 %v2171_v59, %v2171_v59  ;;  %v969_v62 = vld [vmem:[#allocation5 + $0x20] sm:$0xff] }
 0x100   : > { %v384_v2 = vmul.f32 0.0078125, %v355_v63  ;;  %v658_v5 = vmul.f32 %v2174_v60, %v2174_v60  ;;  %v971_v63 = vld [vmem:[#allocation5 + $0x30] sm:$0xff] }
 0x101   : > { %v2181_v3 = vsub.f32 %v2047_v8, %v383_v0  ;;  %667 = vadd.xlane.f32.xlu1 %v650_v61  ;;  %681 = vadd.xlane.f32.xlu0 %v657_v1  ;;  %v1391_v0 = vpack.c.bf16 %v971_v63, %v969_v62  ;;  %v982_v63 = vld [vmem:[#allocation5 + $0x88] sm:$0xff] }
 0x102   : > { %v2184_v4 = vsub.f32 %v2050_v9, %v384_v2  ;;  %v369_v6 = vpop.xlane.xlu0 %368 }
 0x103   : > { %v371_v7 = vpop.xlane.xlu1 %370  ;;  %v391_v32 = vmul.f32 0.0078125, %v369_v6  ;;  %v415_v33 = vmul.f32 %v2181_v3, %v2181_v3 }
 0x104   : > { %v392_v34 = vmul.f32 0.0078125, %v371_v7  ;;  %v416_v9 = vmul.f32 %v2184_v4, %v2184_v4 }
 0x105   : > { %v2191_v35 = vsub.f32 %v2055_v10, %v391_v32  ;;  %683 = vadd.xlane.f32.xlu1 %v658_v5  ;;  %433 = vadd.xlane.f32.xlu0 %v415_v33  ;;  %v967_v10 = vld [vmem:[#allocation5 + $0x10] sm:$0xff]  ;;  %v974_v32 = vld [vmem:[#allocation5 + $0x48] sm:$0xff]  ;;  %v976_v33 = vld [vmem:[#allocation5 + $0x58] sm:$0xff] }
 0x106   : > { %v2194_v8 = vsub.f32 %v2058_v11, %v392_v34  ;;  %v590_v38 = vpop.xlane.xlu0 %589  ;;  %v1387_v49 = vpack.c.bf16 %v967_v10, %v965_v47  ;;  %v978_v10 = vld [vmem:[#allocation5 + $0x68] sm:$0xff] }
 0x107   : > { %v592_v39 = vpop.xlane.xlu1 %591  ;;  %v619_v42 = vmul.f32 0.0078125, %v590_v38  ;;  %v423_v45 = vmul.f32 %v2191_v35, %v2191_v35  ;;  %v973_v38 = vld [vmem:[#allocation5 + $0x40] sm:$0xff] }
 0x108   : > { %v620_v46 = vmul.f32 0.0078125, %v592_v39  ;;  %v424_v53 = vmul.f32 %v2194_v8, %v2194_v8  ;;  %1388 = vmatpush1.bf16.msra.mxu0 %v1387_v49  ;;  %1425 = vmatpush1.bf16.msra.mxu1 %v1387_v49  ;;  %v975_v39 = vld [vmem:[#allocation5 + $0x50] sm:$0xff] }
 0x109   : > { %v2201_v50 = vsub.f32 %v2063_v12, %v619_v42  ;;  %435 = vadd.xlane.f32.xlu1 %v416_v9  ;;  %449 = vadd.xlane.f32.xlu0 %v423_v45  ;;  %v1395_v40 = vpack.c.bf16 %v975_v39, %v973_v38  ;;  %v986_v39 = vld [vmem:[#allocation5 + $0xa8] sm:$0xff] }
 0x10a   : > { %v2204_v11 = vsub.f32 %v2066_v13, %v620_v46  ;;  %v606_v54 = vpop.xlane.xlu0 %605  ;;  %v1389_v13 = vpack.c.bf16 %v972_v57, %v970_v56 }
 0x10b   : > { %v608_v55 = vpop.xlane.xlu1 %607  ;;  %v627_v58 = vmul.f32 0.0078125, %v606_v54  ;;  %v651_v61 = vmul.f32 %v2201_v50, %v2201_v50  ;;  %v977_v54 = vld [vmem:[#allocation5 + $0x60] sm:$0xff] }
 0x10c   : > { %v628_v12 = vmul.f32 0.0078125, %v608_v55  ;;  %v652_v5 = vmul.f32 %v2204_v11, %v2204_v11  ;;  %1390 = vmatprep.subr.bf16.mxu0 %v1389_v13  ;;  %1418 = vmatprep.subr.bf16.mxu1 %v1389_v13  ;;  %v979_v55 = vld [vmem:[#allocation5 + $0x70] sm:$0xff]  ;;  %v984_v13 = vld [vmem:[#allocation5 + $0x98] sm:$0xff] }
 0x10d   : > { %v2211_v1 = vsub.f32 %v2071_v14, %v627_v58  ;;  %451 = vadd.xlane.f32.xlu1 %v424_v53  ;;  %669 = vadd.xlane.f32.xlu0 %v651_v61  ;;  %v1399_v56 = vpack.c.bf16 %v979_v55, %v977_v54  ;;  %v990_v55 = vld [vmem:[#allocation5 + $0xc8] sm:$0xff] }
 0x10e   : > { %v2214_v2 = vsub.f32 %v2074_v15, %v628_v12  ;;  %v357_v6 = vpop.xlane.xlu0 %356  ;;  %1392 = vmatpush1.bf16.msra.mxu0 %v1391_v0  ;;  %1426 = vmatpush1.bf16.msra.mxu1 %v1391_v0  ;;  %v1393_v15 = vpack.c.bf16 %v976_v33, %v974_v32 }
 0x10f   : > { %v359_v7 = vpop.xlane.xlu1 %358  ;;  %v385_v34 = vmul.f32 0.0078125, %v357_v6  ;;  %v659_v9 = vmul.f32 %v2211_v1, %v2211_v1  ;;  %v981_v6 = vld [vmem:[#allocation5 + $0x80] sm:$0xff] }
 0x110   : > { %v386_v14 = vmul.f32 0.0078125, %v359_v7  ;;  %v660_v45 = vmul.f32 %v2214_v2, %v2214_v2  ;;  %1394 = vmatprep.subr.bf16.mxu0 %v1393_v15  ;;  %1419 = vmatprep.subr.bf16.mxu1 %v1393_v15  ;;  %v983_v7 = vld [vmem:[#allocation5 + $0x90] sm:$0xff]  ;;  %v988_v15 = vld [vmem:[#allocation5 + $0xb8] sm:$0xff] }
 0x111   : > { %v2221_v41 = vsub.f32 %v2079_v16, %v385_v34  ;;  %671 = vadd.xlane.f32.xlu1 %v652_v5  ;;  %685 = vadd.xlane.f32.xlu0 %v659_v9  ;;  %v1403_v32 = vpack.c.bf16 %v983_v7, %v981_v6  ;;  %v994_v7 = vld [vmem:[#allocation5 + $0xe8] sm:$0xff] }
 0x112   : > { %v2224_v42 = vsub.f32 %v2082_v17, %v386_v14  ;;  %v373_v46 = vpop.xlane.xlu0 %372  ;;  %1396 = vmatpush1.bf16.msra.mxu0 %v1395_v40  ;;  %1427 = vmatpush1.bf16.msra.mxu1 %v1395_v40  ;;  %v1397_v17 = vpack.c.bf16 %v980_v48, %v978_v10 }
 0x113   : > { %v375_v47 = vpop.xlane.xlu1 %374  ;;  %v393_v49 = vmul.f32 0.0078125, %v373_v46  ;;  %v417_v53 = vmul.f32 %v2221_v41, %v2221_v41  ;;  %v985_v46 = vld [vmem:[#allocation5 + $0xa0] sm:$0xff] }
 0x114   : > { %v394_v16 = vmul.f32 0.0078125, %v375_v47  ;;  %v418_v61 = vmul.f32 %v2224_v42, %v2224_v42  ;;  %1398 = vmatprep.subr.bf16.mxu0 %v1397_v17  ;;  %1420 = vmatprep.subr.bf16.mxu1 %v1397_v17  ;;  %v987_v47 = vld [vmem:[#allocation5 + $0xb0] sm:$0xff]  ;;  %v992_v17 = vld [vmem:[#allocation5 + $0xd8] sm:$0xff] }
 0x115   : > { %v2231_v57 = vsub.f32 %v2087_v18, %v393_v49  ;;  %687 = vadd.xlane.f32.xlu1 %v660_v45  ;;  %437 = vadd.xlane.f32.xlu0 %v417_v53  ;;  %v1407_v10 = vpack.c.bf16 %v987_v47, %v985_v46 }
 0x116   : > { %v2234_v58 = vsub.f32 %v2090_v19, %v394_v16  ;;  %v594_v12 = vpop.xlane.xlu0 %593  ;;  %1400 = vmatpush1.bf16.msra.mxu0 %v1399_v56  ;;  %1428 = vmatpush1.bf16.msra.mxu1 %v1399_v56  ;;  %v1401_v19 = vpack.c.bf16 %v984_v13, %v982_v63 }
 0x117   : > { %v596_v62 = vpop.xlane.xlu1 %595  ;;  %v621_v0 = vmul.f32 0.0078125, %v594_v12  ;;  %v425_v5 = vmul.f32 %v2231_v57, %v2231_v57  ;;  %v989_v12 = vld [vmem:[#allocation5 + $0xc0] sm:$0xff] }
 0x118   : > { %v622_v18 = vmul.f32 0.0078125, %v596_v62  ;;  %v426_v9 = vmul.f32 %v2234_v58, %v2234_v58  ;;  %1402 = vmatprep.subr.bf16.mxu0 %v1401_v19  ;;  %1421 = vmatprep.subr.bf16.mxu1 %v1401_v19  ;;  %v991_v62 = vld [vmem:[#allocation5 + $0xd0] sm:$0xff]  ;;  %v996_v19 = vld [vmem:[#allocation5 + $0xf8] sm:$0xff] }
 0x119   : > { %v2241_v33 = vsub.f32 %v2095_v20, %v621_v0  ;;  %439 = vadd.xlane.f32.xlu1 %v418_v61  ;;  %453 = vadd.xlane.f32.xlu0 %v425_v5  ;;  %v1411_v63 = vpack.c.bf16 %v991_v62, %v989_v12 }
 0x11a   : > { %v2244_v34 = vsub.f32 %v2098_v21, %v622_v18  ;;  %v610_v14 = vpop.xlane.xlu0 %609  ;;  %1404 = vmatpush1.bf16.msra.mxu0 %v1403_v32  ;;  %1429 = vmatpush1.bf16.msra.mxu1 %v1403_v32  ;;  %v1405_v21 = vpack.c.bf16 %v988_v15, %v986_v39 }
 0x11b   : > { %v612_v38 = vpop.xlane.xlu1 %611  ;;  %v629_v40 = vmul.f32 0.0078125, %v610_v14  ;;  %v653_v45 = vmul.f32 %v2241_v33, %v2241_v33  ;;  %v993_v14 = vld [vmem:[#allocation5 + $0xe0] sm:$0xff] }
 0x11c   : > { %v630_v20 = vmul.f32 0.0078125, %v612_v38  ;;  %v654_v53 = vmul.f32 %v2244_v34, %v2244_v34  ;;  %1406 = vmatprep.subr.bf16.mxu0 %v1405_v21  ;;  %1422 = vmatprep.subr.bf16.mxu1 %v1405_v21  ;;  %v995_v38 = vld [vmem:[#allocation5 + $0xf0] sm:$0xff] }
 0x11d   : > { %v2251_v48 = vsub.f32 %v2103_v22, %v629_v40  ;;  %455 = vadd.xlane.f32.xlu1 %v426_v9  ;;  %673 = vadd.xlane.f32.xlu0 %v653_v45  ;;  %v1415_v39 = vpack.c.bf16 %v995_v38, %v993_v14 }
 0x11e   : > { %v2254_v49 = vsub.f32 %v2106_v23, %v630_v20  ;;  %v361_v16 = vpop.xlane.xlu0 %360  ;;  %1408 = vmatpush1.bf16.msra.mxu0 %v1407_v10  ;;  %1430 = vmatpush1.bf16.msra.mxu1 %v1407_v10  ;;  %v1409_v23 = vpack.c.bf16 %v992_v17, %v990_v55  ;;  %v1798_v55 = vmov 0.0  }
 0x11f   : > { %v363_v54 = vpop.xlane.xlu1 %362  ;;  %v387_v56 = vmul.f32 0.0078125, %v361_v16  ;;  %v661_v61 = vmul.f32 %v2251_v48, %v2251_v48  ;;  %1061 = vmatprep.mubr.f32.mxu0 %v1798_v55  ;;  %1085 = vmatprep.mubr.f32.mxu1 %v1798_v55 }
 0x120   : > { %v388_v22 = vmul.f32 0.0078125, %v363_v54  ;;  %v662_v5 = vmul.f32 %v2254_v49, %v2254_v49  ;;  %1410 = vmatprep.subr.bf16.mxu0 %v1409_v23  ;;  %1423 = vmatprep.subr.bf16.mxu1 %v1409_v23 }
 0x121   : > { %v2261_v13 = vsub.f32 %v2111_v24, %v387_v56  ;;  %675 = vadd.xlane.f32.xlu1 %v654_v53  ;;  %689 = vadd.xlane.f32.xlu0 %v661_v61 }
 0x122   : > { %v2264_v0 = vsub.f32 %v2114_v25, %v388_v22  ;;  %v377_v18 = vpop.xlane.xlu0 %376  ;;  %1412 = vmatpush1.bf16.msra.mxu0 %v1411_v63  ;;  %1431 = vmatpush1.bf16.msra.mxu1 %v1411_v63  ;;  %v1413_v25 = vpack.c.bf16 %v996_v19, %v994_v7 }
 0x123   : > { %v379_v6 = vpop.xlane.xlu1 %378  ;;  %v395_v32 = vmul.f32 0.0078125, %v377_v18  ;;  %v419_v9 = vmul.f32 %v2261_v13, %v2261_v13 }
 0x124   : > { %v396_v24 = vmul.f32 0.0078125, %v379_v6  ;;  %v420_v45 = vmul.f32 %v2264_v0, %v2264_v0  ;;  %1414 = vmatprep.subr.bf16.mxu0 %v1413_v25  ;;  %1424 = vmatprep.subr.bf16.mxu1 %v1413_v25 }
 0x125   : > { %v2271_v15 = vsub.f32 %v2119_v26, %v395_v32  ;;  %691 = vadd.xlane.f32.xlu1 %v662_v5  ;;  %441 = vadd.xlane.f32.xlu0 %v419_v9 }
 0x126   : > { %v2274_v40 = vsub.f32 %v2122_v27, %v396_v24  ;;  %v598_v20 = vpop.xlane.xlu0 %597  ;;  %1416 = vmatpush1.bf16.msra.mxu0 %v1415_v39  ;;  %1432 = vmatpush1.bf16.msra.mxu1 %v1415_v39 }
 0x127   : > { %v600_v46 = vpop.xlane.xlu1 %599  ;;  %v623_v47 = vmul.f32 0.0078125, %v598_v20  ;;  %v427_v21 = vmul.f32 %v2271_v15, %v2271_v15 }
 0x128   : > { %v624_v10 = vmul.f32 0.0078125, %v600_v46  ;;  %v428_v53 = vmul.f32 %v2274_v40, %v2274_v40 }
 0x129   : > { %v2281_v26 = vsub.f32 %v2127_v28, %v623_v47  ;;  %443 = vadd.xlane.f32.xlu1 %v420_v45  ;;  %457 = vadd.xlane.f32.xlu0 %v427_v21 }
 0x12a   : > { %v2284_v27 = vsub.f32 %v2130_v29, %v624_v10  ;;  %v614_v16 = vpop.xlane.xlu0 %613 }
 0x12b   : > { %v616_v54 = vpop.xlane.xlu1 %615  ;;  %v631_v17 = vmul.f32 0.0078125, %v614_v16  ;;  %v655_v28 = vmul.f32 %v2281_v26, %v2281_v26 }
 0x12c   : > { %v632_v56 = vmul.f32 0.0078125, %v616_v54  ;;  %v656_v22 = vmul.f32 %v2284_v27, %v2284_v27 }
 0x12d   : > { %v2293_v61 = vsub.f32 %v2135_v30, %v631_v17  ;;  %459 = vadd.xlane.f32.xlu1 %v428_v53  ;;  %677 = vadd.xlane.f32.xlu0 %v655_v28  ;;  %v2307_v53 = vld [vmem:[%s2704_s1] ss:$0 sm:$0xff] }
 0x12e   : > { %v2296_v29 = vsub.f32 %v2138_v31, %v632_v56 }
 0x12f   : > { %v663_v12 = vmul.f32 %v2293_v61, %v2293_v61 }
 0x130   : > { %v664_v62 = vmul.f32 %v2296_v29, %v2296_v29 }
 0x131   : > { %679 = vadd.xlane.f32.xlu1 %v656_v22  ;;  %693 = vadd.xlane.f32.xlu0 %v663_v12  ;;  %v2313_v22 = vld [vmem:[%s2705_s2] ss:$0 sm:$0xff] }
 0x135   : > { %695 = vadd.xlane.f32.xlu1 %v664_v62 }
 0x182   : > { %v430_v23 = vpop.xlane.xlu0 %429 }
 0x183   : > { %v461_v30 = vmul.f32 0.0078125, %v430_v23 }
 0x185   : > { %v477_v63 = vadd.f32 1e-05, %v461_v30 }
 0x186   : > { %v432_v5 = vpop.xlane.xlu1 %431  ;;  %v446_v18 = vpop.xlane.xlu0 %445 }
 0x187   : > { %1524 = vrsqrt.f32 %v477_v63  ;;  %v462_v31 = vmul.f32 0.0078125, %v432_v5  ;;  %v469_v6 = vmul.f32 0.0078125, %v446_v18 }
 0x189   : > { %v478_v7 = vadd.f32 1e-05, %v462_v31  ;;  %v485_v19 = vadd.f32 1e-05, %v469_v6 }
 0x18a   : > { %v448_v32 = vpop.xlane.xlu1 %447  ;;  %v666_v9 = vpop.xlane.xlu0 %665 }
 0x18b   : > { %1526 = vrsqrt.f32 %v478_v7  ;;  %v470_v24 = vmul.f32 0.0078125, %v448_v32  ;;  %v697_v14 = vmul.f32 0.0078125, %v666_v9  ;;  %v905_v9 = vlaneseq }
 0x18c   : > { %1528 = vrsqrt.f32 %v485_v19 }
 0x18d   : > { %v486_v38 = vadd.f32 1e-05, %v470_v24  ;;  %v713_v25 = vadd.f32 1e-05, %v697_v14 }
 0x18e   : > { %v668_v39 = vpop.xlane.xlu1 %667  ;;  %v682_v45 = vpop.xlane.xlu0 %681 }
 0x18f   : > { %1530 = vrsqrt.f32 %v486_v38  ;;  %v698_v20 = vmul.f32 0.0078125, %v668_v39  ;;  %v705_v46 = vmul.f32 0.0078125, %v682_v45 }
 0x190   : > { %1532 = vrsqrt.f32 %v713_v25 }
 0x191   : > { %v1525_v47 = vpop.eup %1524  ;;  %v714_v21 = vadd.f32 1e-05, %v698_v20  ;;  %v721_v10 = vadd.f32 1e-05, %v705_v46 }
 0x192   : > { %v684_v16 = vpop.xlane.xlu1 %683  ;;  %v434_v54 = vpop.xlane.xlu0 %433  ;;  %v509_v17 = vmul.f32 %v1525_v47, %v2143_v36 }
 0x193   : > { %1534 = vrsqrt.f32 %v714_v21  ;;  %v706_v28 = vmul.f32 0.0078125, %v684_v16  ;;  %v463_v56 = vmul.f32 0.0078125, %v434_v54 }
 0x194   : > { %1536 = vrsqrt.f32 %v721_v10  ;;  %v531_v12 = vmul.f32 %v2307_v53, %v509_v17  ;;  %v906_v10 = vshrl.u32 %v905_v9, 7 }
 0x195   : > { %v1527_v62 = vpop.eup %1526  ;;  %v722_v23 = vadd.f32 1e-05, %v706_v28  ;;  %v479_v30 = vadd.f32 1e-05, %v463_v56 }
 0x196   : > { %v1529_v63 = vpop.eup %1528  ;;  %v436_v5 = vpop.xlane.xlu1 %435  ;;  %v510_v36 = vmul.f32 %v1527_v62, %v2151_v43  ;;  %v553_v31 = vadd.f32 %v2313_v22, %v531_v12 }
 0x197   : > { %v450_v18 = vpop.xlane.xlu0 %449  ;;  %1538 = vrsqrt.f32 %v722_v23  ;;  %v464_v6 = vmul.f32 0.0078125, %v436_v5  ;;  %v517_v19 = vmul.f32 %v1529_v63, %v2146_v37 }
 0x198   : > { %v471_v7 = vmul.f32 0.0078125, %v450_v18  ;;  %1540 = vrsqrt.f32 %v479_v30  ;;  %v532_v32 = vmul.f32 %v2307_v53, %v510_v36  ;;  %793 = vst [vmem:[%s2322_s14] sm:$0xff] %v553_v31 }
 0x199   : > { %v1531_v24 = vpop.eup %1530  ;;  %v480_v14 = vadd.f32 1e-05, %v464_v6  ;;  %v539_v43 = vmul.f32 %v2307_v53, %v517_v19  ;;  %v2343_v6 = vmul.u32 2, %v906_v10 }
 0x19a   : > { %v1533_v38 = vpop.eup %1532  ;;  %v487_v25 = vadd.f32 1e-05, %v471_v7  ;;  %v452_v39 = vpop.xlane.xlu1 %451  ;;  %v554_v37 = vadd.f32 %v2313_v22, %v532_v32  ;;  %v518_v20 = vmul.f32 %v1531_v24, %v2154_v44 }
 0x19b   : > { %v670_v45 = vpop.xlane.xlu0 %669  ;;  %1542 = vrsqrt.f32 %v480_v14  ;;  %v472_v46 = vmul.f32 0.0078125, %v452_v39  ;;  %v745_v21 = vmul.f32 %v1533_v38, %v2161_v51  ;;  %v2332_v54 = vadd.f32 %v2313_v22, %v539_v43 }
 0x19c   : > { %v699_v47 = vmul.f32 0.0078125, %v670_v45  ;;  %795 = vst [vmem:[%s2322_s14 + $0x10] sm:$0xff] %v554_v37  ;;  %v540_v16 = vmul.f32 %v2307_v53, %v518_v20  ;;  %1544 = vrsqrt.f32 %v487_v25  ;;  %v1799_v25 = vmov 0  }
 0x19d   : > { %v1535_v17 = vpop.eup %1534  ;;  %v488_v28 = vadd.f32 1e-05, %v472_v46  ;;  %v761_v12 = vmul.f32 %v2307_v53, %v745_v21  ;;  %809 = vst [vmem:[%s2322_s14 + $0x80] sm:$0xff] %v2332_v54 }
 0x19e   : > { %v715_v56 = vadd.f32 1e-05, %v699_v47  ;;  %v1537_v44 = vpop.eup %1536  ;;  %v672_v62 = vpop.xlane.xlu1 %671  ;;  %v746_v30 = vmul.f32 %v1535_v17, %v2164_v52  ;;  %v2337_v51 = vadd.f32 %v2313_v22, %v540_v16 }
 0x19f   : > { %v686_v23 = vpop.xlane.xlu0 %685  ;;  %v700_v63 = vmul.f32 0.0078125, %v672_v62  ;;  %v777_v18 = vadd.f32 %v2313_v22, %v761_v12  ;;  %1546 = vrsqrt.f32 %v488_v28  ;;  %v753_v7 = vmul.f32 %v1537_v44, %v2171_v59 }
 0x1a0   : > { %v707_v5 = vmul.f32 0.0078125, %v686_v23  ;;  %v762_v36 = vmul.f32 %v2307_v53, %v746_v30  ;;  %811 = vst [vmem:[%s2322_s14 + $0x90] sm:$0xff] %v2337_v51  ;;  %1548 = vrsqrt.f32 %v715_v56 }
 0x1a1   : > { %v1539_v52 = vpop.eup %1538  ;;  %v716_v19 = vadd.f32 1e-05, %v700_v63  ;;  %794 = vst [vmem:[%s2322_s14 + $0x8] sm:$0xff] %v777_v18  ;;  %vm825_vm0 = vcmp.gt.f32.partialorder %v777_v18, %v553_v31  ;;  %v769_v46 = vmul.f32 %v2307_v53, %v753_v7 }
 0x1a2   : > { %v723_v32 = vadd.f32 1e-05, %v707_v5  ;;  %v1541_v9 = vpop.eup %1540  ;;  %v688_v24 = vpop.xlane.xlu1 %687  ;;  %v778_v43 = vadd.f32 %v2313_v22, %v762_v36  ;;  %v833_v38 = vsel %vm825_vm0, %v777_v18, %v553_v31  ;;  %v881_v39 = vsel %vm825_vm0, 1, %v1799_v25 }
 0x1a3   : > { %v438_v14 = vpop.xlane.xlu0 %437  ;;  %v754_v59 = vmul.f32 %v1539_v52, %v2174_v60  ;;  %1550 = vrsqrt.f32 %v716_v19  ;;  %v708_v45 = vmul.f32 0.0078125, %v688_v24  ;;  %v511_v21 = vmul.f32 %v1541_v9, %v2181_v3 }
 0x1a4   : > { %v465_v20 = vmul.f32 0.0078125, %v438_v14  ;;  %1552 = vrsqrt.f32 %v723_v32  ;;  %796 = vst [vmem:[%s2322_s14 + $0x18] sm:$0xff] %v778_v43  ;;  %vm841_vm1 = vcmp.gt.f32.partialorder %v778_v43, %v554_v37  ;;  %v785_v12 = vadd.f32 %v2313_v22, %v769_v46 }
 0x1a5   : > { %v770_v47 = vmul.f32 %v2307_v53, %v754_v59  ;;  %v1543_v10 = vpop.eup %1542  ;;  %v724_v16 = vadd.f32 1e-05, %v708_v45  ;;  %v849_v17 = vsel %vm841_vm1, %v778_v43, %v554_v37  ;;  %v873_v28 = vsel %vm841_vm1, 1, %v1799_v25 }
 0x1a6   : > { %v481_v31 = vadd.f32 1e-05, %v465_v20  ;;  %v440_v60 = vpop.xlane.xlu1 %439  ;;  %vm857_vm2 = vcmp.gt.f32.partialorder %v849_v17, %v833_v38  ;;  %v512_v62 = vmul.f32 %v1543_v10, %v2184_v4  ;;  %810 = vst [vmem:[%s2322_s14 + $0x88] sm:$0xff] %v785_v12  ;;  %vm829_vm3 = vcmp.gt.f32.partialorder %v785_v12, %v2332_v54  ;;  %v1545_v5 = vpop.eup %1544 }
 0x1a7   : > { %v454_v56 = vpop.xlane.xlu0 %453  ;;  %v786_v44 = vadd.f32 %v2313_v22, %v770_v47  ;;  %1554 = vrsqrt.f32 %v724_v16  ;;  %v466_v3 = vmul.f32 0.0078125, %v440_v60  ;;  %v865_v30 = vsel %vm857_vm2, %v849_v17, %v833_v38 }
 0x1a8   : > { %v473_v23 = vmul.f32 0.0078125, %v454_v56  ;;  %1556 = vrsqrt.f32 %v481_v31  ;;  %v889_v37 = vsel %vm857_vm2, %v873_v28, %v881_v39  ;;  %v897_v63 = vsel %vm857_vm2, 1, %v1799_v25  ;;  %1062 = vmatmul.mubr.f32.vlgmr.msra.gmra.mrb[0].mxu0 %v865_v30 }
 0x1a9   : > { %812 = vst [vmem:[%s2322_s14 + $0x98] sm:$0xff] %v786_v44  ;;  %v482_v18 = vadd.f32 1e-05, %v466_v3  ;;  %v932_v7 = vmul.u32 16, %v897_v63  ;;  %v837_v4 = vsel %vm829_vm3, %v785_v12, %v2332_v54  ;;  %1067 = vmatprep.mubr.f32.mxu0 %v1798_v55  ;;  %v1547_v52 = vpop.eup %1546  ;;  %vm845_vm4 = vcmp.gt.f32.partialorder %v786_v44, %v2337_v51 }
 0x1aa   : > { %v489_v36 = vadd.f32 1e-05, %v473_v23  ;;  %v456_v19 = vpop.xlane.xlu1 %455  ;;  %v885_v9 = vsel %vm829_vm3, 1, %v1799_v25  ;;  %v533_v24 = vmul.f32 %v2307_v53, %v511_v21  ;;  %v534_v14 = vmul.f32 %v2307_v53, %v512_v62  ;;  %v1549_v43 = vpop.eup %1548 }
 0x1ab   : > { %v674_v32 = vpop.xlane.xlu0 %673  ;;  %1558 = vrsqrt.f32 %v482_v18  ;;  %v941_v38 = vadd.s32 %v2343_v6, %v932_v7  ;;  %v474_v39 = vmul.f32 0.0078125, %v456_v19  ;;  %v853_v54 = vsel %vm845_vm4, %v786_v44, %v2337_v51 }
 0x1ac   : > { %v701_v59 = vmul.f32 0.0078125, %v674_v32  ;;  %1560 = vrsqrt.f32 %v489_v36  ;;  %v877_v45 = vsel %vm845_vm4, 1, %v1799_v25  ;;  %v2375_v20 = vadd.f32 %v2313_v22, %v533_v24 }
 0x1ad   : > { %v1551_v46 = vpop.eup %1550  ;;  %v949_v47 = vadd.s32 %v941_v38, %v889_v37  ;;  %v490_v21 = vadd.f32 1e-05, %v474_v39  ;;  %vm861_vm5 = vcmp.gt.f32.partialorder %v853_v54, %v837_v4  ;;  %v556_v51 = vadd.f32 %v2313_v22, %v534_v14 }
 0x1ae   : > { %v717_v10 = vadd.f32 1e-05, %v701_v59  ;;  %v1553_v16 = vpop.eup %1552  ;;  %v869_v31 = vsel %vm861_vm5, %v853_v54, %v837_v4  ;;  %v893_v17 = vsel %vm861_vm5, %v877_v45, %v885_v9  ;;  %v901_v28 = vsel %vm861_vm5, 1, %v1799_v25  ;;  %v676_v60 = vpop.xlane.xlu1 %675  ;;  %797 = vst [vmem:[%s2322_s14 + $0x20] sm:$0xff] %v2375_v20 }
 0x1af   : > { %v690_v56 = vpop.xlane.xlu0 %689  ;;  %957 = vst [vmem:[%s2383_s19] sm:$0xff] %v949_v47  ;;  %1562 = vrsqrt.f32 %v490_v21  ;;  %v928_v12 = vadd.s32 8, %v901_v28  ;;  %1086 = vmatmul.mubr.f32.vlgmr.msra.gmra.mrb[0].mxu1 %v869_v31  ;;  %v702_v44 = vmul.f32 0.0078125, %v676_v60  ;;  %v747_v3 = vmul.f32 %v1549_v43, %v2201_v50  ;;  %799 = vst [vmem:[%s2322_s14 + $0x30] sm:$0xff] %v556_v51 }
 0x1b0   : > { %v709_v62 = vmul.f32 0.0078125, %v690_v56  ;;  %1564 = vrsqrt.f32 %v717_v10  ;;  %v748_v23 = vmul.f32 %v1551_v46, %v2204_v11  ;;  %1091 = vmatprep.mubr.f32.mxu1 %v1798_v55  ;;  %v519_v30 = vmul.f32 %v1545_v5, %v2191_v35 }
 0x1b1   : > { %v1555_v37 = vpop.eup %1554  ;;  %v936_v63 = vmul.u32 16, %v928_v12  ;;  %v718_v18 = vadd.f32 1e-05, %v702_v44  ;;  %v520_v7 = vmul.f32 %v1547_v52, %v2194_v8  ;;  %v763_v9 = vmul.f32 %v2307_v53, %v747_v3 }
 0x1b2   : > { %v725_v36 = vadd.f32 1e-05, %v709_v62  ;;  %v1557_v4 = vpop.eup %1556  ;;  %v692_v19 = vpop.xlane.xlu1 %691  ;;  %v764_v50 = vmul.f32 %v2307_v53, %v748_v23  ;;  %v541_v11 = vmul.f32 %v2307_v53, %v519_v30  ;;  %v755_v24 = vmul.f32 %v1553_v16, %v2211_v1 }
 0x1b3   : > { %v442_v32 = vpop.xlane.xlu0 %441  ;;  %v945_v14 = vadd.s32 %v2343_v6, %v936_v63  ;;  %1566 = vrsqrt.f32 %v718_v18  ;;  %v710_v35 = vmul.f32 0.0078125, %v692_v19  ;;  %v779_v8 = vadd.f32 %v2313_v22, %v763_v9 }
 0x1b4   : > { %v467_v5 = vmul.f32 0.0078125, %v442_v32  ;;  %1568 = vrsqrt.f32 %v725_v36  ;;  %v780_v52 = vadd.f32 %v2313_v22, %v764_v50  ;;  %v542_v43 = vmul.f32 %v2307_v53, %v520_v7 }
 0x1b5   : > { %v1559_v38 = vpop.eup %1558  ;;  %v953_v39 = vadd.s32 %v945_v14, %v893_v17  ;;  %v726_v59 = vadd.f32 1e-05, %v710_v35  ;;  %v2401_v1 = vadd.f32 %v2313_v22, %v541_v11  ;;  %798 = vst [vmem:[%s2322_s14 + $0x28] sm:$0xff] %v779_v8  ;;  %vm826_vm6 = vcmp.gt.f32.partialorder %v779_v8, %v2375_v20 }
 0x1b6   : > { %v483_v54 = vadd.f32 1e-05, %v467_v5  ;;  %v2403_v45 = vpop.eup %1560  ;;  %v444_v46 = vpop.xlane.xlu1 %443  ;;  %800 = vst [vmem:[%s2322_s14 + $0x38] sm:$0xff] %v780_v52  ;;  %vm842_vm7 = vcmp.gt.f32.partialorder %v780_v52, %v556_v51  ;;  %v564_v21 = vadd.f32 %v2313_v22, %v542_v43  ;;  %v756_v10 = vmul.f32 %v1555_v37, %v2214_v2 }
 0x1b7   : > { %v458_v47 = vpop.xlane.xlu0 %457  ;;  %961 = vst [vmem:[%s2383_s19 + $0x20] sm:$0xff] %v953_v39  ;;  %1570 = vrsqrt.f32 %v726_v59  ;;  %v468_v16 = vmul.f32 0.0078125, %v444_v46  ;;  %v834_v17 = vsel %vm826_vm6, %v779_v8, %v2375_v20  ;;  %813 = vst [vmem:[%s2322_s14 + $0xa0] sm:$0xff] %v2401_v1  ;;  %v850_v28 = vsel %vm842_vm7, %v780_v52, %v556_v51 }
 0x1b8   : > { %v475_v31 = vmul.f32 0.0078125, %v458_v47  ;;  %1572 = vrsqrt.f32 %v483_v54  ;;  %v874_v60 = vsel %vm842_vm7, 1, %v1799_v25  ;;  %v882_v56 = vsel %vm826_vm6, 1, %v1799_v25  ;;  %815 = vst [vmem:[%s2322_s14 + $0xb0] sm:$0xff] %v564_v21 }
 0x1b9   : > { %v2417_v12 = vpop.eup %1562  ;;  %v484_v44 = vadd.f32 1e-05, %v468_v16  ;;  %vm858_vm8 = vcmp.gt.f32.partialorder %v850_v28, %v834_v17  ;;  %v771_v2 = vmul.f32 %v2307_v53, %v755_v24  ;;  %v772_v51 = vmul.f32 %v2307_v53, %v756_v10 }
 0x1ba   : > { %v491_v62 = vadd.f32 1e-05, %v475_v31  ;;  %v1565_v3 = vpop.eup %1564  ;;  %v866_v23 = vsel %vm858_vm8, %v850_v28, %v834_v17  ;;  %v890_v30 = vsel %vm858_vm8, %v874_v60, %v882_v56  ;;  %v898_v20 = vsel %vm858_vm8, 1, %v1799_v25  ;;  %v460_v37 = vpop.xlane.xlu1 %459 }
 0x1bb   : > { %v678_v63 = vpop.xlane.xlu0 %677  ;;  %1574 = vrsqrt.f32 %v484_v44  ;;  %v925_v18 = vadd.s32 2, %v898_v20  ;;  %1068 = vmatmul.mubr.f32.gmra.mrb[2].mxu0 %v866_v23  ;;  %v476_v36 = vmul.f32 0.0078125, %v460_v37  ;;  %v787_v19 = vadd.f32 %v2313_v22, %v771_v2 }
 0x1bc   : > { %v703_v7 = vmul.f32 0.0078125, %v678_v63  ;;  %1576 = vrsqrt.f32 %v491_v62  ;;  %v788_v32 = vadd.f32 %v2313_v22, %v772_v51  ;;  %1073 = vmatprep.mubr.f32.mxu0 %v1798_v55  ;;  %v513_v9 = vmul.f32 %v1557_v4, %v2221_v41 }
 0x1bd   : > { %v1567_v50 = vpop.eup %1566  ;;  %v933_v11 = vmul.u32 16, %v925_v18  ;;  %v492_v24 = vadd.f32 1e-05, %v476_v36  ;;  %v514_v35 = vmul.f32 %v1559_v38, %v2224_v42  ;;  %814 = vst [vmem:[%s2322_s14 + $0xa8] sm:$0xff] %v787_v19  ;;  %vm830_vm9 = vcmp.gt.f32.partialorder %v787_v19, %v2401_v1 }
 0x1be   : > { %v719_v14 = vadd.f32 1e-05, %v703_v7  ;;  %v1569_v5 = vpop.eup %1568  ;;  %816 = vst [vmem:[%s2322_s14 + $0xb8] sm:$0xff] %v788_v32  ;;  %vm846_vm10 = vcmp.gt.f32.partialorder %v788_v32, %v564_v21  ;;  %v680_v8 = vpop.xlane.xlu1 %679  ;;  %v535_v52 = vmul.f32 %v2307_v53, %v513_v9  ;;  %v749_v43 = vmul.f32 %v1565_v3, %v2241_v33 }
 0x1bf   : > { %v942_v39 = vadd.s32 %v2343_v6, %v933_v11  ;;  %1578 = vrsqrt.f32 %v492_v24  ;;  %v838_v41 = vsel %vm830_vm9, %v787_v19, %v2401_v1  ;;  %v854_v4 = vsel %vm846_vm10, %v788_v32, %v564_v21  ;;  %v694_v59 = vpop.xlane.xlu0 %693 }
 0x1c0   : > { %1580 = vrsqrt.f32 %v719_v14  ;;  %vm862_vm11 = vcmp.gt.f32.partialorder %v854_v4, %v838_v41  ;;  %v878_v42 = vsel %vm846_vm10, 1, %v1799_v25  ;;  %v886_v38 = vsel %vm830_vm9, 1, %v1799_v25 }
 0x1c1   : > { %v1571_v54 = vpop.eup %1570  ;;  %v950_v46 = vadd.s32 %v942_v39, %v890_v30  ;;  %v870_v47 = vsel %vm862_vm11, %v854_v4, %v838_v41  ;;  %v894_v10 = vsel %vm862_vm11, %v878_v42, %v886_v38  ;;  %v902_v33 = vsel %vm862_vm11, 1, %v1799_v25 }
 0x1c2   : > { %v1573_v16 = vpop.eup %1572  ;;  %v929_v31 = vadd.s32 10, %v902_v33  ;;  %1092 = vmatmul.mubr.f32.gmra.mrb[2].mxu1 %v870_v47  ;;  %v704_v17 = vmul.f32 0.0078125, %v680_v8  ;;  %v711_v1 = vmul.f32 0.0078125, %v694_v59  ;;  %v696_v21 = vpop.xlane.xlu1 %695  ;;  %v536_v28 = vmul.f32 %v2307_v53, %v514_v35 }
 0x1c3   : > { %958 = vst [vmem:[%s2383_s19 + $0x8] sm:$0xff] %v950_v46  ;;  %v712_v60 = vmul.f32 0.0078125, %v696_v21  ;;  %v557_v56 = vadd.f32 %v2313_v22, %v535_v52  ;;  %v750_v44 = vmul.f32 %v1567_v50, %v2244_v34  ;;  %v765_v62 = vmul.f32 %v2307_v53, %v749_v43  ;;  %1097 = vmatprep.mubr.f32.mxu1 %v1798_v55 }
 0x1c4   : > { %v937_v2 = vmul.u32 16, %v929_v31  ;;  %v720_v3 = vadd.f32 1e-05, %v704_v17  ;;  %v727_v23 = vadd.f32 1e-05, %v711_v1  ;;  %v558_v30 = vadd.f32 %v2313_v22, %v536_v28 }
 0x1c5   : > { %v1575_v20 = vpop.eup %1574  ;;  %v728_v37 = vadd.f32 1e-05, %v712_v60  ;;  %v766_v63 = vmul.f32 %v2307_v53, %v750_v44  ;;  %v781_v51 = vadd.f32 %v2313_v22, %v765_v62  ;;  %801 = vst [vmem:[%s2322_s14 + $0x40] sm:$0xff] %v557_v56  ;;  %v521_v34 = vmul.f32 %v2403_v45, %v2231_v57 }
 0x1c6   : > { %v1577_v18 = vpop.eup %1576  ;;  %v946_v36 = vadd.s32 %v2343_v6, %v937_v2  ;;  %1582 = vrsqrt.f32 %v720_v3  ;;  %803 = vst [vmem:[%s2322_s14 + $0x50] sm:$0xff] %v558_v30  ;;  %v522_v7 = vmul.f32 %v2417_v12, %v2234_v58  ;;  %v757_v19 = vmul.f32 %v1569_v5, %v2251_v48 }
 0x1c7   : > { %1584 = vrsqrt.f32 %v727_v23  ;;  %v782_v32 = vadd.f32 %v2313_v22, %v766_v63  ;;  %802 = vst [vmem:[%s2322_s14 + $0x48] sm:$0xff] %v781_v51  ;;  %vm827_vm12 = vcmp.gt.f32.partialorder %v781_v51, %v557_v56  ;;  %v543_v9 = vmul.f32 %v2307_v53, %v521_v34 }
 0x1c8   : > { %v954_v57 = vadd.s32 %v946_v36, %v894_v10  ;;  %1586 = vrsqrt.f32 %v728_v37  ;;  %v835_v45 = vsel %vm827_vm12, %v781_v51, %v557_v56  ;;  %v544_v58 = vmul.f32 %v2307_v53, %v522_v7 }
 0x1c9   : > { %v1579_v50 = vpop.eup %1578  ;;  %804 = vst [vmem:[%s2322_s14 + $0x58] sm:$0xff] %v782_v32  ;;  %vm843_vm13 = vcmp.gt.f32.partialorder %v782_v32, %v558_v30  ;;  %v565_v48 = vadd.f32 %v2313_v22, %v543_v9  ;;  %v758_v12 = vmul.f32 %v1571_v54, %v2254_v49  ;;  %v773_v35 = vmul.f32 %v2307_v53, %v757_v19 }
 0x1ca   : > { %v1581_v11 = vpop.eup %1580  ;;  %962 = vst [vmem:[%s2383_s19 + $0x28] sm:$0xff] %v954_v57  ;;  %v851_v24 = vsel %vm843_vm13, %v782_v32, %v558_v30  ;;  %v875_v14 = vsel %vm843_vm13, 1, %v1799_v25  ;;  %v515_v5 = vmul.f32 %v1573_v16, %v2261_v13  ;;  %v566_v8 = vadd.f32 %v2313_v22, %v544_v58 }
 0x1cb   : > { %vm859_vm14 = vcmp.gt.f32.partialorder %v851_v24, %v835_v45  ;;  %v774_v52 = vmul.f32 %v2307_v53, %v758_v12  ;;  %817 = vst [vmem:[%s2322_s14 + $0xc0] sm:$0xff] %v565_v48  ;;  %v516_v43 = vmul.f32 %v1575_v20, %v2264_v0  ;;  %v883_v39 = vsel %vm827_vm12, 1, %v1799_v25 }
 0x1cc   : > { %v867_v49 = vsel %vm859_vm14, %v851_v24, %v835_v45  ;;  %v899_v41 = vsel %vm859_vm14, 1, %v1799_v25  ;;  %v789_v4 = vadd.f32 %v2313_v22, %v773_v35  ;;  %819 = vst [vmem:[%s2322_s14 + $0xd0] sm:$0xff] %v566_v8  ;;  %v537_v42 = vmul.f32 %v2307_v53, %v515_v5 }
 0x1cd   : > { %v926_v59 = vadd.s32 4, %v899_v41  ;;  %1074 = vmatmul.mubr.f32.gmra.mrb[4].mxu0 %v867_v49  ;;  %v790_v13 = vadd.f32 %v2313_v22, %v774_v52  ;;  %v538_v38 = vmul.f32 %v2307_v53, %v516_v43  ;;  %v891_v54 = vsel %vm859_vm14, %v875_v14, %v883_v39 }
 0x1ce   : > { %818 = vst [vmem:[%s2322_s14 + $0xc8] sm:$0xff] %v789_v4  ;;  %vm831_vm15 = vcmp.gt.f32.partialorder %v789_v4, %v565_v48  ;;  %1079 = vmatprep.mubr.f32.mxu0 %v1798_v55  ;;  %v751_v0 = vmul.f32 %v1581_v11, %v2281_v26  ;;  %v523_v47 = vmul.f32 %v1577_v18, %v2271_v15 }
 0x1cf   : > { %v934_v46 = vmul.u32 16, %v926_v59  ;;  %820 = vst [vmem:[%s2322_s14 + $0xd8] sm:$0xff] %v790_v13  ;;  %vm847_vm0 = vcmp.gt.f32.partialorder %v790_v13, %v566_v8  ;;  %v524_v10 = vmul.f32 %v1579_v50, %v2274_v40  ;;  %v839_v16 = vsel %vm831_vm15, %v789_v4, %v565_v48 }
 0x1d0   : > { %v1583_v33 = vpop.eup %1582  ;;  %v855_v31 = vsel %vm847_vm0, %v790_v13, %v566_v8  ;;  %v2487_v17 = vadd.f32 %v2313_v22, %v537_v42  ;;  %v560_v1 = vadd.f32 %v2313_v22, %v538_v38  ;;  %v767_v40 = vmul.f32 %v2307_v53, %v751_v0 }
 0x1d1   : > { %v1585_v26 = vpop.eup %1584  ;;  %v943_v21 = vadd.s32 %v2343_v6, %v934_v46  ;;  %vm863_vm1 = vcmp.gt.f32.partialorder %v855_v31, %v839_v16  ;;  %v752_v15 = vmul.f32 %v1583_v33, %v2284_v27  ;;  %v879_v44 = vsel %vm847_vm0, 1, %v1799_v25 }
 0x1d2   : > { %v1587_v28 = vpop.eup %1586  ;;  %v759_v60 = vmul.f32 %v1585_v26, %v2293_v61  ;;  %v871_v56 = vsel %vm863_vm1, %v855_v31, %v839_v16  ;;  %v903_v62 = vsel %vm863_vm1, 1, %v1799_v25  ;;  %805 = vst [vmem:[%s2322_s14 + $0x60] sm:$0xff] %v2487_v17  ;;  %807 = vst [vmem:[%s2322_s14 + $0x70] sm:$0xff] %v560_v1  ;;  %v783_v23 = vadd.f32 %v2313_v22, %v767_v40 }
 0x1d3   : > { %v760_v27 = vmul.f32 %v1587_v28, %v2296_v29  ;;  %v951_v2 = vadd.s32 %v943_v21, %v891_v54  ;;  %v930_v3 = vadd.s32 12, %v903_v62  ;;  %1098 = vmatmul.mubr.f32.gmra.mrb[4].mxu1 %v871_v56  ;;  %v768_v61 = vmul.f32 %v2307_v53, %v752_v15 }
 0x1d4   : > { %1103 = vmatprep.mubr.f32.mxu1 %v1798_v55  ;;  %v545_v30 = vmul.f32 %v2307_v53, %v523_v47  ;;  %v546_v20 = vmul.f32 %v2307_v53, %v524_v10  ;;  %v775_v37 = vmul.f32 %v2307_v53, %v759_v60  ;;  %v887_v29 = vsel %vm831_vm15, 1, %v1799_v25  ;;  %806 = vst [vmem:[%s2322_s14 + $0x68] sm:$0xff] %v783_v23 }
 0x1d5   : > { %959 = vst [vmem:[%s2383_s19 + $0x10] sm:$0xff] %v951_v2  ;;  %v938_v63 = vmul.u32 16, %v930_v3  ;;  %v784_v51 = vadd.f32 %v2313_v22, %v768_v61  ;;  %v776_v34 = vmul.f32 %v2307_v53, %v760_v27  ;;  %vm828_vm2 = vcmp.gt.f32.partialorder %v783_v23, %v2487_v17 }
 0x1d6   : > { %v567_v55 = vadd.f32 %v2313_v22, %v545_v30  ;;  %v568_v18 = vadd.f32 %v2313_v22, %v546_v20  ;;  %v791_v36 = vadd.f32 %v2313_v22, %v775_v37  ;;  %v895_v7 = vsel %vm863_vm1, %v879_v44, %v887_v29 }
 0x1d7   : > { %v947_v19 = vadd.s32 %v2343_v6, %v938_v63  ;;  %808 = vst [vmem:[%s2322_s14 + $0x78] sm:$0xff] %v784_v51  ;;  %vm844_vm3 = vcmp.gt.f32.partialorder %v784_v51, %v560_v1  ;;  %v836_v53 = vsel %vm828_vm2, %v783_v23, %v2487_v17  ;;  %v792_v9 = vadd.f32 %v2313_v22, %v776_v34 }
 0x1d8   : > { %v852_v32 = vsel %vm844_vm3, %v784_v51, %v560_v1  ;;  %821 = vst [vmem:[%s2322_s14 + $0xe0] sm:$0xff] %v567_v55  ;;  %822 = vst [vmem:[%s2322_s14 + $0xe8] sm:$0xff] %v791_v36  ;;  %vm832_vm4 = vcmp.gt.f32.partialorder %v791_v36, %v567_v55  ;;  %v876_v12 = vsel %vm844_vm3, 1, %v1799_v25  ;;  %v884_v5 = vsel %vm828_vm2, 1, %v1799_v25 }
 0x1d9   : > { %823 = vst [vmem:[%s2322_s14 + $0xf0] sm:$0xff] %v568_v18  ;;  %v955_v57 = vadd.s32 %v947_v19, %v895_v7  ;;  %vm860_vm5 = vcmp.gt.f32.partialorder %v852_v32, %v836_v53  ;;  %824 = vst [vmem:[%s2322_s14 + $0xf8] sm:$0xff] %v792_v9  ;;  %vm848_vm6 = vcmp.gt.f32.partialorder %v792_v9, %v568_v18  ;;  %v888_v41 = vsel %vm832_vm4, 1, %v1799_v25 }
 0x1da   : > { %v868_v45 = vsel %vm860_vm5, %v852_v32, %v836_v53  ;;  %v900_v50 = vsel %vm860_vm5, 1, %v1799_v25  ;;  %v840_v48 = vsel %vm832_vm4, %v791_v36, %v567_v55  ;;  %v856_v22 = vsel %vm848_vm6, %v792_v9, %v568_v18 }
 0x1db   : > { %963 = vst [vmem:[%s2383_s19 + $0x30] sm:$0xff] %v955_v57  ;;  %v927_v58 = vadd.s32 6, %v900_v50  ;;  %1080 = vmatmul.mubr.f32.gmra.mrb[6].mxu0 %v868_v45  ;;  %vm864_vm7 = vcmp.gt.f32.partialorder %v856_v22, %v840_v48  ;;  %v892_v52 = vsel %vm860_vm5, %v876_v12, %v884_v5  ;;  %v880_v43 = vsel %vm848_vm6, 1, %v1799_v25 }
 0x1dc   : > { %v872_v24 = vsel %vm864_vm7, %v856_v22, %v840_v48  ;;  %v904_v14 = vsel %vm864_vm7, 1, %v1799_v25  ;;  %v896_v59 = vsel %vm864_vm7, %v880_v43, %v888_v41 }
 0x1dd   : > { %v935_v11 = vmul.u32 16, %v927_v58  ;;  %v931_v35 = vadd.s32 14, %v904_v14  ;;  %1104 = vmatmul.mubr.f32.gmra.mrb[6].mxu1 %v872_v24 }
 0x1df   : > { %v944_v8 = vadd.s32 %v2343_v6, %v935_v11  ;;  %v939_v49 = vmul.u32 16, %v931_v35 }
 0x1e1   : > { %v952_v39 = vadd.s32 %v944_v8, %v892_v52  ;;  %v948_v4 = vadd.s32 %v2343_v6, %v939_v49 }
 0x1e3   : > { %960 = vst [vmem:[%s2383_s19 + $0x18] sm:$0xff] %v952_v39  ;;  %v956_v13 = vadd.s32 %v948_v4, %v896_v59 }
 0x1e5   : > { %964 = vst [vmem:[%s2383_s19 + $0x38] sm:$0xff] %v956_v13 }
 0x1e6   : > { %1659 = shalt.err (!%p1656_p9)
}
 0x1e7   : > { %s1660_s19 = scalar_lea.hbm %s2560_s16, 1024  ;;  %s1664_s9 = scalar_lea.hbm %s2708_s5, 2048 }
 0x1e8   : > { %p1661_p1 = scmp.ne.s32.totalorder %s2560_s16, %s1660_s19  ;;  %p1665_p7 = scmp.lt.u32.totalorder %s2560_s16, %s2708_s5 }
 0x1e9   : > { %p1666_p13 = scmp.lt.u32.totalorder %s1664_s9, %s1660_s19  ;;  %p1668_p6 = scmp.lt.u32.totalorder %s1660_s19, %s2560_s16 }
 0x1ea   : > { %p1662_p2 = pnand %p1661_p1, %p1939_p10 }
 0x1eb   : > { %p1667_p4 = por %p1666_p13, %p1665_p7 }
 0x1ec   : > { %p1663_p3 = pneg %p1662_p2 }
 0x1ed   : > { %p1669_p8 = por %p1668_p6, %p1667_p4 }
 0x1ef   : > { %p1670_p12 = pnand %p1669_p8, %p1663_p3 }
 0x1f1   : > { %1673 = shalt.err (!%p1670_p12)
}
 0x1f2   : > { %s1801_s7 = smov 128   ;;  %s1802_s8 = smov 8  }
 0x1f3   : > { %1440 = dma.vmem_to_hbm [thread:$0]  (%p1939_p10), %s2563_s28, 1024, %s2560_s16, %s2565_s29, %s1801_s7, %s1801_s7, %s1802_s8  }
 0x1f4   : > { %s1384_s17 = sshll.u32 %s1784_s24, 12  ;;  %s1190_s19 = sshll.u32 %s2322_s14, 4  ;;  %s2596_s19 = int_to_ptr.vmem [resolvable:$true] %s1190_s19 }
 0x1f5   : > { %s2593_s9 = scalar_lea.hbm %s2709_s6, %s1384_s17  ;;  %s1674_s20 = scalar_lea.vmem %s2596_s19, 4096 }
 0x1f6   : > { %p1675_p11 = scmp.ne.s32.totalorder %s2596_s19, %s1674_s20  ;;  %s1803_s27 = smov [#allocation10]  }
 0x1f7   : > { %s1678_s0 = sshll.u32 %s1803_s27, 4  ;;  %s1679_s0 = int_to_ptr.vmem [resolvable:$false] %s1678_s0 }
 0x1f8   : > { %p1676_p0 = pnand %p1675_p11, %p1939_p10  ;;  %s1680_s16 = scalar_lea.vmem %s1679_s0, 8192 }
 0x1f9   : > { %p1681_p9 = scmp.lt.s32.totalorder %s2596_s19, %s1679_s0  ;;  %p1682_p1 = scmp.lt.s32.totalorder %s1680_s16, %s1674_s20 }
 0x1fa   : > { %p1677_p5 = pneg %p1676_p0 }
 0x1fb   : > { %p1683_p2 = por %p1682_p1, %p1681_p9 }
 0x1fd   : > { %p1684_p3 = pnand %p1683_p2, %p1677_p5 }
 0x1ff   : > { %1687 = shalt.err (!%p1684_p3)
}
 0x200   : > { %s1688_s14 = scalar_lea.hbm %s2593_s9, 4096  ;;  %s1692_s8 = scalar_lea.hbm %s2709_s6, 8192 }
 0x201   : > { %p1689_p7 = scmp.ne.s32.totalorder %s2593_s9, %s1688_s14  ;;  %p1693_p6 = scmp.lt.u32.totalorder %s2593_s9, %s2709_s6 }
 0x202   : > { %p1694_p8 = scmp.lt.u32.totalorder %s1692_s8, %s1688_s14  ;;  %p1696_p11 = scmp.lt.u32.totalorder %s1688_s14, %s2593_s9 }
 0x203   : > { %p1690_p13 = pnand %p1689_p7, %p1939_p10 }
 0x204   : > { %p1695_p12 = por %p1694_p8, %p1693_p6 }
 0x205   : > { %p1691_p4 = pneg %p1690_p13 }
 0x206   : > { %p1697_p0 = por %p1696_p11, %p1695_p12 }
 0x208   : > { %p1698_p5 = pnand %p1697_p0, %p1691_p4 }
 0x20a   : > { %1701 = shalt.err (!%p1698_p5)
}
 0x20b   : > { %s1804_s12 = smov 256   ;;  %s1805_s15 = smov 16  }
 0x20c   : > { %1441 = dma.vmem_to_hbm [thread:$0]  (%p1939_p10), %s2596_s19, 4096, %s2593_s9, %s2565_s29, %s1804_s12, %s1804_s12, %s1805_s15  }
 0x20d   : > { %s1365_s20 = sshll.u32 %s1998_s13, 7  ;;  %s1382_s29 = sshll.u32 %s1784_s24, 11 }
 0x20e   : > { %s2624_s27 = scalar_lea.vmem [#allocation7], %s1365_s20  ;;  %s2645_s14 = scalar_lea.hbm %s2707_s4, %s1382_s29 }
 0x20f   : > { %s1153_s9 = sshll.u32 %s2624_s27, 4  ;;  %s1127_s28 = scalar_lea.sflag [#allocation4], %s1998_s13  ;;  %s2647_s9 = int_to_ptr.vmem [resolvable:$true] %s1153_s9 }
 0x210   : > { %s1702_s24 = scalar_lea.vmem %s2647_s9, 2048  ;;  %s1806_s7 = smov [#allocation7]  }
 0x211   : > { %p1703_p9 = scmp.ne.s32.totalorder %s2647_s9, %s1702_s24  ;;  %s1706_s8 = sshll.u32 %s1806_s7, 4  ;;  %s1707_s8 = int_to_ptr.vmem [resolvable:$false] %s1706_s8 }
 0x212   : > { %s1708_s17 = scalar_lea.vmem %s1707_s8, 4096  ;;  %p1709_p3 = scmp.lt.s32.totalorder %s2647_s9, %s1707_s8 }
 0x213   : > { %p1704_p1 = pnand %p1703_p9, %p1939_p10  ;;  %p1710_p7 = scmp.lt.s32.totalorder %s1708_s17, %s1702_s24 }
 0x215   : > { %p1705_p2 = pneg %p1704_p1  ;;  %p1711_p13 = por %p1710_p7, %p1709_p3 }
 0x217   : > { %p1712_p4 = pnand %p1711_p13, %p1705_p2 }
 0x27b   : > { %v1063_v6 = vpop.f32.mrb[0].mxu0 }
 0x27c   : > { %1110 = vst [vmem:[%s2624_s27] sm:$0xff] %v1063_v6  ;;  %v1065_v25 = vpop.f32.mrb[1].mxu0 }
 0x27d   : > { %1111 = vst [vmem:[%s2624_s27 + $0x8] sm:$0xff] %v1065_v25 }
 0x282   : > { %v1087_v42 = vpop.f32.mrb[0].mxu1 }
 0x283   : > { %1118 = vst [vmem:[%s2624_s27 + $0x40] sm:$0xff] %v1087_v42  ;;  %v1089_v38 = vpop.f32.mrb[1].mxu1 }
 0x284   : > { %1119 = vst [vmem:[%s2624_s27 + $0x48] sm:$0xff] %v1089_v38 }
 0x28e   : > { %v1069_v54 = vpop.f32.mrb[2].mxu0 }
 0x28f   : > { %1112 = vst [vmem:[%s2624_s27 + $0x10] sm:$0xff] %v1069_v54  ;;  %v1071_v0 = vpop.f32.mrb[3].mxu0 }
 0x290   : > { %1113 = vst [vmem:[%s2624_s27 + $0x18] sm:$0xff] %v1071_v0 }
 0x295   : > { %v1093_v46 = vpop.f32.mrb[2].mxu1 }
 0x296   : > { %1120 = vst [vmem:[%s2624_s27 + $0x50] sm:$0xff] %v1093_v46  ;;  %v1095_v47 = vpop.f32.mrb[3].mxu1 }
 0x297   : > { %1121 = vst [vmem:[%s2624_s27 + $0x58] sm:$0xff] %v1095_v47 }
 0x2a0   : > { %v1075_v10 = vpop.f32.mrb[4].mxu0 }
 0x2a1   : > { %1114 = vst [vmem:[%s2624_s27 + $0x20] sm:$0xff] %v1075_v10  ;;  %v1077_v33 = vpop.f32.mrb[5].mxu0 }
 0x2a2   : > { %1115 = vst [vmem:[%s2624_s27 + $0x28] sm:$0xff] %v1077_v33 }
 0x2a6   : > { %v1099_v16 = vpop.f32.mrb[4].mxu1 }
 0x2a7   : > { %1122 = vst [vmem:[%s2624_s27 + $0x60] sm:$0xff] %v1099_v16  ;;  %v1101_v31 = vpop.f32.mrb[5].mxu1 }
 0x2a8   : > { %1123 = vst [vmem:[%s2624_s27 + $0x68] sm:$0xff] %v1101_v31 }
 0x2ae   : > { %v1081_v17 = vpop.f32.mrb[6].mxu0 }
 0x2af   : > { %1116 = vst [vmem:[%s2624_s27 + $0x30] sm:$0xff] %v1081_v17  ;;  %v1083_v1 = vpop.f32.mrb[7].mxu0 }
 0x2b0   : > { %1117 = vst [vmem:[%s2624_s27 + $0x38] sm:$0xff] %v1083_v1  ;;  %v1105_v26 = vpop.f32.mrb[6].mxu1 }
 0x2b1   : > { %1124 = vst [vmem:[%s2624_s27 + $0x70] sm:$0xff] %v1105_v26  ;;  %v1107_v21 = vpop.f32.mrb[7].mxu1 }
 0x2b2   : > { %1125 = vst [vmem:[%s2624_s27 + $0x78] sm:$0xff] %v1107_v21 }
 0x2b3   : > { %1715 = shalt.err (!%p1712_p4)
}
 0x2b4   : > { %s1716_s0 = scalar_lea.hbm %s2645_s14, 2048  ;;  %s1720_s29 = scalar_lea.hbm %s2707_s4, 4096 }
 0x2b5   : > { %p1717_p6 = scmp.ne.s32.totalorder %s2645_s14, %s1716_s0  ;;  %p1721_p11 = scmp.lt.u32.totalorder %s2645_s14, %s2707_s4 }
 0x2b6   : > { %p1722_p0 = scmp.lt.u32.totalorder %s1720_s29, %s1716_s0  ;;  %p1724_p9 = scmp.lt.u32.totalorder %s1716_s0, %s2645_s14 }
 0x2b7   : > { %p1718_p8 = pnand %p1717_p6, %p1939_p10 }
 0x2b8   : > { %p1723_p5 = por %p1722_p0, %p1721_p11 }
 0x2b9   : > { %p1719_p12 = pneg %p1718_p8 }
 0x2ba   : > { %p1725_p1 = por %p1724_p9, %p1723_p5 }
 0x2bc   : > { %p1726_p2 = pnand %p1725_p1, %p1719_p12 }
 0x2be   : > { %1729 = shalt.err (!%p1726_p2)
}
 0x2bf   : > { %1439 = dma.vmem_to_hbm [thread:$0]  (%p1939_p10), %s2647_s9, 2048, %s2645_s14, %s1127_s28, %s1804_s12, %s1804_s12, %s1805_s15  }
 0x2c0 PF: > { %s1205_s24 = sand.u32 1, %s1772_s21   ;;  %p2732_p3 = scmp.ne.s32.totalorder %s2718_s30, 0 }
 0x2c1   : > { %p2733_p7 = scmp.ge.s32.totalorder %s1792_s26, 2  ;;  %s1206_s7 = scalar_lea.sflag [#allocation4], %s1205_s24 }
 0x2c3   : > { %p1454_p13 = pnand %p2733_p7, %p2732_p3 }
 0x2c5   : > { %1763 = dma.done.wait (!%p1454_p13), %s1206_s7, 2048  }
 0x2c6   : > { %1765 = vsyncadd (!%p1454_p13), %s1206_s7, 4294965248  ;;  %s2734_s10 = sadd.s32 4294967294, %s1792_s26  }
 0x2c7   : > { %s1214_s8 = sand.u32 1, %s2734_s10  }
 0x2c8   : > { %s1215_s17 = scalar_lea.sflag [#allocation9], %s1214_s8 }
 0x2c9   : > { %1767 = dma.done.wait (!%p1454_p13), %s1215_s17, 5120  }
 0x2ca   : > { %1769 = vsyncadd (!%p1454_p13), %s1215_s17, 4294962176  ;;  %s27_s26 = sadd.s32 1, %s1792_s26   ;;  %s2735_s21 = smov %s1776_s22 }
 0x2cb   : > { %p24_p10 = scmp.ge.s32.totalorder %s27_s26, 4   ;;  %s2736_s22 = smov %s1780_s23 }
 0x2cc   : > { %s2737_s23 = smov %s1948_s18  ;;  %s2738_s24 = smov %s1788_s25 }
 0x2cd   : > { %s2739_s25 = smov %s2741_s11  ;;  %26 = sbr.rel (!%p24_p10) target bundleno = 11 (0xb), region = 117 }
 0x2d4   :  { %1229 = vsyncpa [#allocation3], 1 }
 0x2d5   :  { %1231 = vsyncpa [#allocation3 + $0x1], 1 }
 0x2d6   :  { %1232 = vsyncpa [#allocation6], 1 }
 0x2d7   :  { %1233 = vsyncpa [#allocation4], 1 }
 0x2d8   :  { %1235 = vsyncpa [#allocation4 + $0x1], 1 }
 0x2d9   :  { %1236 = vsyncpa [#allocation9], 1 }
 0x2da   :  { %1238 = vsyncpa [#allocation9 + $0x1], 1 }

</bundles_post_ra>
